<compile_context>
chip_gen: v7x
topology: tpu7x:2x2x1
jax: 0.10.0
libtpu: 0.0.40
codegen_flags: <defaults>
</compile_context>

<pallas_src>
import functools

import jax
import jax.numpy as jnp
from jax import lax
from jax.experimental import pallas as pl
from jax.experimental.pallas import tpu as pltpu


def _round_up(v, m):
    return (v + m - 1) // m * m


def bn_relu_conv_kernel(x_ref, mask_ref, gamma_ref, beta_ref, w_ref, o_ref,
                        yw_ref, *, count, wp, ro0, cin):
    """Fused BN (training stats) -> ReLU -> 3x3 conv (width-im2col form).

    x_ref:     (rows, 3*cin)   width-im2col'd, zero-padded, row-flattened input;
                               lane group g holds the copy shifted by dw = g-1
    mask_ref:  (rows, 3*cin)   1.0 where the underlying sample is an interior
                               pixel, 0.0 on halo / extra-pad positions
    gamma_ref: (1, cin)        BN weight
    beta_ref:  (1, cin)        BN bias
    w_ref:     (3*cin, 3*128)  packed conv weights; lane group dh holds the
                               (3*cin, Cout) kernel-row-dh matrix, 0-padded to 128
    o_ref:     (n_out, 128)    lane-dense conv output (valid in [:, :Cout])
    yw_ref:    (rows, 3*128)   scratch: per-kernel-row partial products
    """
    eps = 1e-5
    x = x_ref[...]                                        # (rows, 3*cin) f32
    xc = x[:, cin:2 * cin]                                # center (unshifted) copy
    mc = mask_ref[:, cin:2 * cin]                         # its interior mask

    # --- BatchNorm2d statistics (training mode), two-pass -------------------
    # Halo / pad rows of the center copy are exactly zero, so they do not
    # perturb the sums; divide by the true element count N*H*W.
    inv_n = 1.0 / count
    mean = jnp.sum(xc, axis=0, keepdims=True) * inv_n     # (1, cin)
    d = (xc - mean) * mc                                  # re-zero pad rows
    var = jnp.sum(d * d, axis=0, keepdims=True) * inv_n   # biased variance
    scale = gamma_ref[...] * lax.rsqrt(var + eps)         # (1, cin)
    bias = beta_ref[...] - mean * scale                   # (1, cin)

    # Tile scale/bias across the three width-shifted lane groups (full-vreg,
    # lane-aligned concatenation -> no lane shuffles).
    scale3 = jnp.concatenate([scale, scale, scale], axis=1)   # (1, 3*cin)
    bias3 = jnp.concatenate([bias, bias, bias], axis=1)       # (1, 3*cin)

    # --- normalize + ReLU, then re-zero halo rows (conv zero padding) -------
    act = jnp.maximum(x * scale3 + bias3, 0.0) * mask_ref[...]

    # --- conv: ONE lane-dense MXU matmul against packed weights -------------
    yw_ref[...] = jnp.dot(act, w_ref[...], preferred_element_type=jnp.float32)

    # --- combine the 3 kernel-row (dh) taps: sublane-aligned shifted adds ---
    n_out = o_ref.shape[0]
    acc = yw_ref[pl.ds(ro0 - wp, n_out), pl.ds(0, 128)]        # dh = 0
    for dh in (1, 2):                                          # static unroll
        acc = acc + yw_ref[pl.ds(ro0 + (dh - 1) * wp, n_out),
                           pl.ds(dh * 128, 128)]
    o_ref[...] = acc                                           # unmasked vst


def _shift_w(a, wp):
    """Width im2col: concat copies of `a` sampled at q-1, q, q+1 on channels."""
    left = jnp.pad(a, ((0, 0), (1, 0), (0, 0)))[:, :wp, :]     # a[p, q-1]
    right = jnp.pad(a, ((0, 0), (0, 1), (0, 0)))[:, 1:, :]     # a[p, q+1]
    return jnp.concatenate([left, a, right], axis=-1)


@jax.jit
def bn_relu_conv(x_nchw, gamma, beta, w_oihw):
    """x_nchw: (1, Cin, H, W), w_oihw: (Cout, Cin, 3, 3) -> (1, Cout, H, W)."""
    N, Cin, H, W = x_nchw.shape
    Cout = w_oihw.shape[0]
    assert N == 1, "flattened-row scheme assumes batch 1 (per module spec)"
    Hp = H + 2
    Wp = _round_up(W + 2, 8)        # padded width, multiple of 8
    COUT_P = 128                    # lane-padded per-tap output group

    # Flattened-row geometry (Python ints baked into the kernel).
    lead = 7                        # so ro0 - Wp (= lead + 1) is a multiple of 8
    ro0 = lead + Wp + 1             # flat row of conv-center for output (0, 0)
    n_out = H * Wp                  # output rows (gutter columns dropped below)
    rows = _round_up(max(lead + Hp * Wp, ro0 + Wp + n_out), 8)
    assert ro0 % 8 == 0 and (ro0 - Wp) % 8 == 0 and n_out % 8 == 0

    # Zero-padded NHWC activation and its interior mask (fused under jit).
    x_hwc = jnp.transpose(x_nchw[0], (1, 2, 0)).astype(jnp.float32)    # (H,W,Cin)
    x_pad = jnp.pad(x_hwc, ((1, 1), (1, Wp - W - 1), (0, 0)))          # (Hp,Wp,Cin)
    m_pad = jnp.pad(jnp.ones((H, W, Cin), jnp.float32),
                    ((1, 1), (1, Wp - W - 1), (0, 0)))                 # (Hp,Wp,Cin)

    # Width im2col (3 shifted copies on channels), flatten, add lead/tail rows.
    def _flat(a):
        a3 = _shift_w(a, Wp).reshape(Hp * Wp, 3 * Cin)
        return jnp.pad(a3, ((lead, rows - lead - Hp * Wp), (0, 0)))

    x_flat = _flat(x_pad)            # (rows, 3*Cin)
    m_flat = _flat(m_pad)            # (rows, 3*Cin) pre-broadcast row mask

    # Pack conv weights: lane group dh holds the (3*Cin, Cout) kernel-row-dh
    # matrix (rows grouped by dw), zero-padded from Cout to 128 lanes.
    w_t = jnp.transpose(w_oihw, (2, 3, 1, 0)).astype(jnp.float32)      # [dh,dw,c,o]
    wcat = w_t.reshape(3, 3 * Cin, Cout)                               # [dh, dw*Cin+c, o]
    wcat = jnp.pad(wcat, ((0, 0), (0, 0), (0, COUT_P - Cout)))         # (3, 3*Cin, 128)
    w_packed = jnp.transpose(wcat, (1, 0, 2)).reshape(3 * Cin, 3 * COUT_P)

    kernel = functools.partial(bn_relu_conv_kernel,
                               count=float(N * H * W), wp=Wp, ro0=ro0, cin=Cin)

    out_block = pl.pallas_call(
        kernel,
        out_shape=jax.ShapeDtypeStruct((n_out, COUT_P), jnp.float32),
        in_specs=[pl.BlockSpec(memory_space=pltpu.MemorySpace.VMEM)] * 5,
        out_specs=pl.BlockSpec(memory_space=pltpu.MemorySpace.VMEM),
        scratch_shapes=[pltpu.VMEM((rows, 3 * COUT_P), jnp.float32)],
    )(x_flat, m_flat,
      gamma.reshape(1, Cin).astype(jnp.float32),
      beta.reshape(1, Cin).astype(jnp.float32),
      w_packed)

    # Row i of out_block is spatial (h, w) with i = h*Wp + w; drop the gutter
    # columns and lane padding, back to NCHW.  (Jitted -> fuses with the call.)
    out_hw = out_block.reshape(H, Wp, COUT_P)[:, :W, :Cout]            # (H,W,Cout)
    return jnp.transpose(out_hw, (2, 0, 1))[None]                      # (1,Cout,H,W)


def reference(x_nchw, gamma, beta, w_oihw):
    eps = 1e-5
    mean = jnp.mean(x_nchw, axis=(0, 2, 3), keepdims=True)
    var = jnp.mean(jnp.square(x_nchw - mean), axis=(0, 2, 3), keepdims=True)
    act = (x_nchw - mean) * lax.rsqrt(var + eps)
    act = act * gamma[None, :, None, None] + beta[None, :, None, None]
    act = jnp.maximum(act, 0.0)
    return lax.conv_general_dilated(
        act, w_oihw, window_strides=(1, 1), padding=((1, 1), (1, 1)),
        dimension_numbers=("NCHW", "OIHW", "NCHW"))


if __name__ == "__main__":
    key = jax.random.PRNGKey(0)
    kx, kg, kb, kw = jax.random.split(key, 4)

    N, Cin, H, W, Cout = 1, 128, 7, 7, 32
    x = jax.random.normal(kx, (N, Cin, H, W), dtype=jnp.float32)
    gamma = 1.0 + 0.1 * jax.random.normal(kg, (Cin,), dtype=jnp.float32)
    beta = 0.1 * jax.random.normal(kb, (Cin,), dtype=jnp.float32)
    w = 0.05 * jax.random.normal(kw, (Cout, Cin, 3, 3), dtype=jnp.float32)

    out = bn_relu_conv(x, gamma, beta, w)
    out = jax.block_until_ready(out)

    ref = jax.block_until_ready(reference(x, gamma, beta, w))
    assert out.shape == (N, Cout, H, W), out.shape
    assert jnp.allclose(out, ref, atol=1e-4, rtol=1e-4), (
        float(jnp.max(jnp.abs(out - ref))))

    print("KERNEL_OK")
</pallas_src>

<mosaic_0001>
module attributes {stable_mosaic.version = 11 : i64} {
  func.func @bn_relu_conv_kernel(%arg0: memref<152x384xf32, #tpu.memory_space<vmem>>, %arg1: memref<152x384xf32, #tpu.memory_space<vmem>>, %arg2: memref<1x128xf32, #tpu.memory_space<vmem>>, %arg3: memref<1x128xf32, #tpu.memory_space<vmem>>, %arg4: memref<384x384xf32, #tpu.memory_space<vmem>>, %arg5: memref<112x128xf32, #tpu.memory_space<vmem>>, %arg6: memref<152x384xf32, #tpu.memory_space<vmem>>) attributes {dimension_semantics = [], scalar_prefetch = 0 : i64, scratch_operands = 1 : i64, tpu.core_type = #tpu.core_type<tc>} {
    %c0 = arith.constant 0 : index
    %c0_0 = arith.constant 0 : index
    %0 = vector.load %arg0[%c0, %c0_0] : memref<152x384xf32, #tpu.memory_space<vmem>>, vector<152x384xf32>
    %1 = vector.extract_strided_slice %0 {offsets = [0, 128], sizes = [152, 128], strides = [1, 1]} : vector<152x384xf32> to vector<152x128xf32>
    %c0_1 = arith.constant 0 : index
    %c128 = arith.constant 128 : index
    %2 = vector.load %arg1[%c0_1, %c128] : memref<152x384xf32, #tpu.memory_space<vmem>>, vector<152x128xf32>
    %cst = arith.constant dense<0.000000e+00> : vector<128xf32>
    %3 = vector.multi_reduction <add>, %1, %cst [0] : vector<152x128xf32> to vector<128xf32>
    %4 = vector.shape_cast %3 : vector<128xf32> to vector<1x128xf32>
    %cst_2 = arith.constant 0.0204081628 : f32
    %5 = vector.broadcast %cst_2 : f32 to vector<1x128xf32>
    %6 = arith.mulf %4, %5 : vector<1x128xf32>
    %7 = vector.broadcast %6 : vector<1x128xf32> to vector<152x128xf32>
    %8 = arith.subf %1, %7 : vector<152x128xf32>
    %9 = arith.mulf %8, %2 : vector<152x128xf32>
    %10 = arith.mulf %9, %9 : vector<152x128xf32>
    %cst_3 = arith.constant dense<0.000000e+00> : vector<128xf32>
    %11 = vector.multi_reduction <add>, %10, %cst_3 [0] : vector<152x128xf32> to vector<128xf32>
    %12 = vector.shape_cast %11 : vector<128xf32> to vector<1x128xf32>
    %cst_4 = arith.constant 0.0204081628 : f32
    %13 = vector.broadcast %cst_4 : f32 to vector<1x128xf32>
    %14 = arith.mulf %12, %13 : vector<1x128xf32>
    %c0_5 = arith.constant 0 : index
    %c0_6 = arith.constant 0 : index
    %15 = vector.load %arg2[%c0_5, %c0_6] : memref<1x128xf32, #tpu.memory_space<vmem>>, vector<1x128xf32>
    %cst_7 = arith.constant 9.99999974E-6 : f32
    %16 = vector.broadcast %cst_7 : f32 to vector<1x128xf32>
    %17 = arith.addf %14, %16 : vector<1x128xf32>
    %18 = math.rsqrt %17 : vector<1x128xf32>
    %19 = arith.mulf %15, %18 : vector<1x128xf32>
    %c0_8 = arith.constant 0 : index
    %c0_9 = arith.constant 0 : index
    %20 = vector.load %arg3[%c0_8, %c0_9] : memref<1x128xf32, #tpu.memory_space<vmem>>, vector<1x128xf32>
    %21 = arith.mulf %6, %19 : vector<1x128xf32>
    %22 = arith.subf %20, %21 : vector<1x128xf32>
    %23 = tpu.concatenate %19, %19, %19 in 1 : vector<1x128xf32>, vector<1x128xf32>, vector<1x128xf32> -> vector<1x384xf32>
    %24 = tpu.concatenate %22, %22, %22 in 1 : vector<1x128xf32>, vector<1x128xf32>, vector<1x128xf32> -> vector<1x384xf32>
    %25 = vector.broadcast %23 : vector<1x384xf32> to vector<152x384xf32>
    %26 = arith.mulf %0, %25 : vector<152x384xf32>
    %27 = vector.broadcast %24 : vector<1x384xf32> to vector<152x384xf32>
    %28 = arith.addf %26, %27 : vector<152x384xf32>
    %cst_10 = arith.constant 0.000000e+00 : f32
    %29 = vector.broadcast %cst_10 : f32 to vector<152x384xf32>
    %30 = arith.maximumf %28, %29 : vector<152x384xf32>
    %c0_11 = arith.constant 0 : index
    %c0_12 = arith.constant 0 : index
    %31 = vector.load %arg1[%c0_11, %c0_12] : memref<152x384xf32, #tpu.memory_space<vmem>>, vector<152x384xf32>
    %32 = arith.mulf %30, %31 : vector<152x384xf32>
    %c0_13 = arith.constant 0 : index
    %c0_14 = arith.constant 0 : index
    %33 = vector.load %arg4[%c0_13, %c0_14] : memref<384x384xf32, #tpu.memory_space<vmem>>, vector<384x384xf32>
    %cst_15 = arith.constant dense<0.000000e+00> : vector<152x384xf32>
    %34 = tpu.matmul %32, %33, %cst_15 {dimension_numbers = #tpu.dot_dimension_numbers<[1], [0], [0], [1], [0, 0, 1, 1], [], []>} : vector<152x384xf32>, vector<384x384xf32>, vector<152x384xf32> -> vector<152x384xf32>
    %c0_16 = arith.constant 0 : index
    %c0_17 = arith.constant 0 : index
    %35 = vector.load %arg6[%c0_16, %c0_17] : memref<152x384xf32, #tpu.memory_space<vmem>>, vector<152x384xf32>
    tpu.vector_store %arg6[%c0_16, %c0_17], %34 {strides = array<i32>} : memref<152x384xf32, #tpu.memory_space<vmem>>, vector<152x384xf32>,
    %c8 = arith.constant 8 : index
    %c0_18 = arith.constant 0 : index
    %36 = vector.load %arg6[%c8, %c0_18] : memref<152x384xf32, #tpu.memory_space<vmem>>, vector<112x128xf32>
    %c24 = arith.constant 24 : index
    %c128_19 = arith.constant 128 : index
    %37 = vector.load %arg6[%c24, %c128_19] : memref<152x384xf32, #tpu.memory_space<vmem>>, vector<112x128xf32>
    %38 = arith.addf %36, %37 : vector<112x128xf32>
    %c40 = arith.constant 40 : index
    %c256 = arith.constant 256 : index
    %39 = vector.load %arg6[%c40, %c256] : memref<152x384xf32, #tpu.memory_space<vmem>>, vector<112x128xf32>
    %40 = arith.addf %38, %39 : vector<112x128xf32>
    %c0_20 = arith.constant 0 : index
    %c0_21 = arith.constant 0 : index
    %41 = vector.load %arg5[%c0_20, %c0_21] : memref<112x128xf32, #tpu.memory_space<vmem>>, vector<112x128xf32>
    tpu.vector_store %arg5[%c0_20, %c0_21], %40 {strides = array<i32>} : memref<112x128xf32, #tpu.memory_space<vmem>>, vector<112x128xf32>,
    return
  }
}

</mosaic_0001>

<bundles_post_ra>
// kernel: bn_relu_conv.1
= control target key start
LH: loop header
LB: loop body
LE: loop exit
PB: predicated region body
PF: predicated region fallthrough
CT: control target
= control target key end

     0   :  { %v3276_v0 = vmov 0.0|0.0   ;;  %vm1801_vm0 = vmmov 0   ;;  %s3270_s4 = inlined_call_operand.vmem [shape: f32[384,384], index: 4, kind: input, shape index: {}]   ;;  %s3271_s0 = inlined_call_operand.vmem [shape: f32[152,384], index: 0, kind: input, shape index: {}]   ;;  %s3272_s1 = inlined_call_operand.vmem [shape: f32[152,384], index: 1, kind: input, shape index: {}]   ;;  %s3273_s2 = inlined_call_operand.vmem [shape: f32[1,128], index: 2, kind: input, shape index: {}]   ;;  %s3274_s3 = inlined_call_operand.vmem [shape: f32[1,128], index: 3, kind: input, shape index: {}]   ;;  %s3275_s5 = inlined_call_operand.vmem [shape: f32[112,128], index: 5, kind: output, shape index: {}]  }
   0x1   :  { %1690 = vmatprep.subr.bf16.mxu1 %v3276_v0  ;;  %v504_v1 = vld [vmem:[%s3270_s4 + $0x8] sm:$0xff]  ;;  %v507_v2 = vld [vmem:[%s3270_s4 + $0x20] sm:$0xff]  ;;  %v505_v3 = vld [vmem:[%s3270_s4 + $0x10] sm:$0xff] }
   0x2   :  { %v1594_v4 = vpack.c.bf16 %v507_v2, %v504_v1  ;;  %v508_v5 = vld [vmem:[%s3270_s4 + $0x28] sm:$0xff]  ;;  %v503_v6 = vld [vmem:[%s3270_s4] sm:$0xff]  ;;  %v506_v7 = vld [vmem:[%s3270_s4 + $0x18] sm:$0xff] }
   0x3   :  { %v1691_v8 = vpack.c.bf16 %v508_v5, %v505_v3  ;;  %v1596_v9 = vpack.c.bf16 %v506_v7, %v503_v6  ;;  %v510_v10 = vld [vmem:[%s3270_s4 + $0x38] sm:$0xff]  ;;  %v513_v11 = vld [vmem:[%s3270_s4 + $0x50] sm:$0xff]  ;;  %v511_v12 = vld [vmem:[%s3270_s4 + $0x40] sm:$0xff] }
   0x4   :  { %1595 = vmatprep.subr.bf16.mxu0 %v1594_v4  ;;  %v1598_v13 = vpack.c.bf16 %v513_v11, %v510_v10  ;;  %v514_v14 = vld [vmem:[%s3270_s4 + $0x58] sm:$0xff]  ;;  %v509_v15 = vld [vmem:[%s3270_s4 + $0x30] sm:$0xff]  ;;  %v512_v16 = vld [vmem:[%s3270_s4 + $0x48] sm:$0xff] }
   0x5   :  { %1692 = vmatpush1.bf16.msra.mxu1 %v1691_v8  ;;  %1597 = vmatpush1.bf16.msra.mxu0 %v1596_v9  ;;  %v1694_v17 = vpack.c.bf16 %v514_v14, %v511_v12  ;;  %v1600_v18 = vpack.c.bf16 %v512_v16, %v509_v15  ;;  %v516_v19 = vld [vmem:[%s3270_s4 + $0x68] sm:$0xff]  ;;  %v519_v20 = vld [vmem:[%s3270_s4 + $0x80] sm:$0xff]  ;;  %v517_v21 = vld [vmem:[%s3270_s4 + $0x70] sm:$0xff] }
   0x6   :  { %1693 = vmatprep.subr.bf16.mxu1 %v3276_v0  ;;  %1599 = vmatprep.subr.bf16.mxu0 %v1598_v13  ;;  %v1602_v22 = vpack.c.bf16 %v519_v20, %v516_v19  ;;  %v520_v23 = vld [vmem:[%s3270_s4 + $0x88] sm:$0xff]  ;;  %v515_v24 = vld [vmem:[%s3270_s4 + $0x60] sm:$0xff]  ;;  %v518_v25 = vld [vmem:[%s3270_s4 + $0x78] sm:$0xff] }
   0x7   :  { %v522_v26 = vld [vmem:[%s3270_s4 + $0x98] sm:$0xff]  ;;  %v525_v27 = vld [vmem:[%s3270_s4 + $0xb0] sm:$0xff]  ;;  %v1697_v28 = vpack.c.bf16 %v520_v23, %v517_v21  ;;  %v1604_v29 = vpack.c.bf16 %v518_v25, %v515_v24  ;;  %v523_v30 = vld [vmem:[%s3270_s4 + $0xa0] sm:$0xff] }
   0x8   :  { %v1606_v31 = vpack.c.bf16 %v525_v27, %v522_v26  ;;  %v526_v32 = vld [vmem:[%s3270_s4 + $0xb8] sm:$0xff]  ;;  %v521_v33 = vld [vmem:[%s3270_s4 + $0x90] sm:$0xff]  ;;  %v524_v34 = vld [vmem:[%s3270_s4 + $0xa8] sm:$0xff] }
   0x9   :  { %1695 = vmatpush1.bf16.msra.mxu1 %v1694_v17  ;;  %1601 = vmatpush1.bf16.msra.mxu0 %v1600_v18  ;;  %v528_v35 = vld [vmem:[%s3270_s4 + $0xc8] sm:$0xff]  ;;  %v531_v36 = vld [vmem:[%s3270_s4 + $0xe0] sm:$0xff]  ;;  %v1700_v37 = vpack.c.bf16 %v526_v32, %v523_v30  ;;  %v1608_v38 = vpack.c.bf16 %v524_v34, %v521_v33  ;;  %v529_v39 = vld [vmem:[%s3270_s4 + $0xd0] sm:$0xff] }
   0xa   :  { %1696 = vmatprep.subr.bf16.mxu1 %v3276_v0  ;;  %1603 = vmatprep.subr.bf16.mxu0 %v1602_v22  ;;  %v1610_v40 = vpack.c.bf16 %v531_v36, %v528_v35  ;;  %v532_v41 = vld [vmem:[%s3270_s4 + $0xe8] sm:$0xff]  ;;  %v527_v42 = vld [vmem:[%s3270_s4 + $0xc0] sm:$0xff]  ;;  %v530_v43 = vld [vmem:[%s3270_s4 + $0xd8] sm:$0xff] }
   0xb   :  { %v534_v44 = vld [vmem:[%s3270_s4 + $0xf8] sm:$0xff]  ;;  %v537_v45 = vld [vmem:[%s3270_s4 + $0x110] sm:$0xff]  ;;  %v1703_v46 = vpack.c.bf16 %v532_v41, %v529_v39  ;;  %v1612_v47 = vpack.c.bf16 %v530_v43, %v527_v42  ;;  %v535_v48 = vld [vmem:[%s3270_s4 + $0x100] sm:$0xff] }
   0xc   :  { %v1614_v49 = vpack.c.bf16 %v537_v45, %v534_v44  ;;  %v538_v50 = vld [vmem:[%s3270_s4 + $0x118] sm:$0xff]  ;;  %v533_v51 = vld [vmem:[%s3270_s4 + $0xf0] sm:$0xff]  ;;  %v536_v52 = vld [vmem:[%s3270_s4 + $0x108] sm:$0xff] }
   0xd   :  { %1698 = vmatpush1.bf16.msra.mxu1 %v1697_v28  ;;  %1605 = vmatpush1.bf16.msra.mxu0 %v1604_v29  ;;  %v540_v53 = vld [vmem:[%s3270_s4 + $0x128] sm:$0xff]  ;;  %v543_v54 = vld [vmem:[%s3270_s4 + $0x140] sm:$0xff]  ;;  %v1706_v55 = vpack.c.bf16 %v538_v50, %v535_v48  ;;  %v1616_v56 = vpack.c.bf16 %v536_v52, %v533_v51  ;;  %v541_v57 = vld [vmem:[%s3270_s4 + $0x130] sm:$0xff] }
   0xe   :  { %1699 = vmatprep.subr.bf16.mxu1 %v3276_v0  ;;  %1607 = vmatprep.subr.bf16.mxu0 %v1606_v31  ;;  %v1618_v58 = vpack.c.bf16 %v543_v54, %v540_v53  ;;  %v544_v59 = vld [vmem:[%s3270_s4 + $0x148] sm:$0xff]  ;;  %v539_v60 = vld [vmem:[%s3270_s4 + $0x120] sm:$0xff]  ;;  %v542_v61 = vld [vmem:[%s3270_s4 + $0x138] sm:$0xff] }
   0xf   :  { %v546_v62 = vld [vmem:[%s3270_s4 + $0x158] sm:$0xff]  ;;  %v549_v63 = vld [vmem:[%s3270_s4 + $0x170] sm:$0xff]  ;;  %v1709_v1 = vpack.c.bf16 %v544_v59, %v541_v57  ;;  %v1620_v2 = vpack.c.bf16 %v542_v61, %v539_v60  ;;  %v547_v3 = vld [vmem:[%s3270_s4 + $0x160] sm:$0xff] }
  0x10   :  { %v1622_v4 = vpack.c.bf16 %v549_v63, %v546_v62  ;;  %v550_v5 = vld [vmem:[%s3270_s4 + $0x178] sm:$0xff]  ;;  %v545_v6 = vld [vmem:[%s3270_s4 + $0x150] sm:$0xff]  ;;  %v548_v7 = vld [vmem:[%s3270_s4 + $0x168] sm:$0xff] }
  0x11   :  { %1701 = vmatpush1.bf16.msra.mxu1 %v1700_v37  ;;  %1609 = vmatpush1.bf16.msra.mxu0 %v1608_v38  ;;  %v552_v8 = vld [vmem:[%s3270_s4 + $0x188] sm:$0xff]  ;;  %v555_v9 = vld [vmem:[%s3270_s4 + $0x1a0] sm:$0xff]  ;;  %v1712_v10 = vpack.c.bf16 %v550_v5, %v547_v3  ;;  %v1624_v11 = vpack.c.bf16 %v548_v7, %v545_v6  ;;  %v553_v12 = vld [vmem:[%s3270_s4 + $0x190] sm:$0xff] }
  0x12   :  { %1702 = vmatprep.subr.bf16.mxu1 %v3276_v0  ;;  %1611 = vmatprep.subr.bf16.mxu0 %v1610_v40  ;;  %v1626_v13 = vpack.c.bf16 %v555_v9, %v552_v8  ;;  %v556_v14 = vld [vmem:[%s3270_s4 + $0x1a8] sm:$0xff]  ;;  %v551_v15 = vld [vmem:[%s3270_s4 + $0x180] sm:$0xff]  ;;  %v554_v16 = vld [vmem:[%s3270_s4 + $0x198] sm:$0xff] }
  0x13   :  { %v558_v17 = vld [vmem:[%s3270_s4 + $0x1b8] sm:$0xff]  ;;  %v561_v18 = vld [vmem:[%s3270_s4 + $0x1d0] sm:$0xff]  ;;  %v559_v19 = vld [vmem:[%s3270_s4 + $0x1c0] sm:$0xff]  ;;  %v1715_v20 = vpack.c.bf16 %v556_v14, %v553_v12  ;;  %v1628_v21 = vpack.c.bf16 %v554_v16, %v551_v15 }
  0x14   :  { %v2014_v22 = vld [vmem:[%s3271_s0 + $0x8] sm:$0xff]  ;;  %v2019_v23 = vld [vmem:[%s3271_s0 + $0x20] sm:$0xff]  ;;  %v2024_v24 = vld [vmem:[%s3271_s0 + $0x38] sm:$0xff]  ;;  %v1630_v25 = vpack.c.bf16 %v561_v18, %v558_v17 }
  0x15   :  { %1704 = vmatpush1.bf16.msra.mxu1 %v1703_v46  ;;  %1613 = vmatpush1.bf16.msra.mxu0 %v1612_v47  ;;  %v562_v26 = vld [vmem:[%s3270_s4 + $0x1d8] sm:$0xff]  ;;  %v557_v27 = vld [vmem:[%s3270_s4 + $0x1b0] sm:$0xff]  ;;  %v560_v28 = vld [vmem:[%s3270_s4 + $0x1c8] sm:$0xff]  ;;  %v96_v29 = vadd.f32 %v2019_v23, %v2014_v22 }
  0x16   :  { %1705 = vmatprep.subr.bf16.mxu1 %v3276_v0  ;;  %1615 = vmatprep.subr.bf16.mxu0 %v1614_v49  ;;  %v564_v30 = vld [vmem:[%s3270_s4 + $0x1e8] sm:$0xff]  ;;  %v567_v31 = vld [vmem:[%s3270_s4 + $0x200] sm:$0xff]  ;;  %v2047_v32 = vld [vmem:[%s3271_s0 + $0x50] sm:$0xff]  ;;  %v1718_v34 = vpack.c.bf16 %v562_v26, %v559_v19  ;;  %v1632_v35 = vpack.c.bf16 %v560_v28, %v557_v27 }
  0x17   :  { %v97_v33 = vadd.f32 %v96_v29, %v2024_v24  ;;  %v565_v36 = vld [vmem:[%s3270_s4 + $0x1f0] sm:$0xff]  ;;  %v2056_v37 = vld [vmem:[%s3271_s0 + $0x68] sm:$0xff]  ;;  %v1634_v38 = vpack.c.bf16 %v567_v31, %v564_v30  ;;  %v563_v40 = vld [vmem:[%s3270_s4 + $0x1e0] sm:$0xff] }
  0x18   :  { %v568_v39 = vld [vmem:[%s3270_s4 + $0x208] sm:$0xff]  ;;  %v566_v41 = vld [vmem:[%s3270_s4 + $0x1f8] sm:$0xff]  ;;  %v573_v44 = vld [vmem:[%s3270_s4 + $0x230] sm:$0xff] }
  0x19   :  { %1707 = vmatpush1.bf16.msra.mxu1 %v1706_v55  ;;  %1617 = vmatpush1.bf16.msra.mxu0 %v1616_v56  ;;  %v98_v42 = vadd.f32 %v97_v33, %v2047_v32  ;;  %v570_v43 = vld [vmem:[%s3270_s4 + $0x218] sm:$0xff]  ;;  %v2078_v45 = vld [vmem:[%s3271_s0 + $0x80] sm:$0xff]  ;;  %v1721_v47 = vpack.c.bf16 %v568_v39, %v565_v36  ;;  %v1636_v48 = vpack.c.bf16 %v566_v41, %v563_v40  ;;  %v569_v53 = vld [vmem:[%s3270_s4 + $0x210] sm:$0xff] }
  0x1a   :  { %1708 = vmatprep.subr.bf16.mxu1 %v3276_v0  ;;  %1619 = vmatprep.subr.bf16.mxu0 %v1618_v58  ;;  %v571_v49 = vld [vmem:[%s3270_s4 + $0x220] sm:$0xff]  ;;  %v2087_v50 = vld [vmem:[%s3271_s0 + $0x98] sm:$0xff]  ;;  %v1638_v51 = vpack.c.bf16 %v573_v44, %v570_v43  ;;  %v572_v54 = vld [vmem:[%s3270_s4 + $0x228] sm:$0xff] }
  0x1b   :  { %v99_v46 = vadd.f32 %v98_v42, %v2056_v37  ;;  %v574_v52 = vld [vmem:[%s3270_s4 + $0x238] sm:$0xff]  ;;  %v576_v56 = vld [vmem:[%s3270_s4 + $0x248] sm:$0xff]  ;;  %v579_v57 = vld [vmem:[%s3270_s4 + $0x260] sm:$0xff]  ;;  %v1640_v61 = vpack.c.bf16 %v572_v54, %v569_v53 }
  0x1c   :  { %v2109_v58 = vld [vmem:[%s3271_s0 + $0xb0] sm:$0xff]  ;;  %v1724_v60 = vpack.c.bf16 %v574_v52, %v571_v49  ;;  %v2118_v63 = vld [vmem:[%s3271_s0 + $0xc8] sm:$0xff]  ;;  %v575_v3 = vld [vmem:[%s3270_s4 + $0x240] sm:$0xff] }
  0x1d   :  { %1710 = vmatpush1.bf16.msra.mxu1 %v1709_v1  ;;  %1621 = vmatpush1.bf16.msra.mxu0 %v1620_v2  ;;  %v100_v55 = vadd.f32 %v99_v46, %v2078_v45  ;;  %v577_v62 = vld [vmem:[%s3270_s4 + $0x250] sm:$0xff]  ;;  %v1642_v1 = vpack.c.bf16 %v579_v57, %v576_v56  ;;  %v580_v2 = vld [vmem:[%s3270_s4 + $0x268] sm:$0xff]  ;;  %v582_v6 = vld [vmem:[%s3270_s4 + $0x278] sm:$0xff] }
  0x1e   :  { %1711 = vmatprep.subr.bf16.mxu1 %v3276_v0  ;;  %1623 = vmatprep.subr.bf16.mxu0 %v1622_v4  ;;  %v578_v4 = vld [vmem:[%s3270_s4 + $0x258] sm:$0xff]  ;;  %v585_v7 = vld [vmem:[%s3270_s4 + $0x290] sm:$0xff]  ;;  %v2140_v8 = vld [vmem:[%s3271_s0 + $0xe0] sm:$0xff] }
  0x1f   :  { %v101_v59 = vadd.f32 %v100_v55, %v2087_v50  ;;  %v583_v12 = vld [vmem:[%s3270_s4 + $0x280] sm:$0xff]  ;;  %v1646_v14 = vpack.c.bf16 %v585_v7, %v582_v6  ;;  %v586_v15 = vld [vmem:[%s3270_s4 + $0x298] sm:$0xff]  ;;  %v581_v16 = vld [vmem:[%s3270_s4 + $0x270] sm:$0xff] }
  0x20   :  { %v584_v17 = vld [vmem:[%s3270_s4 + $0x288] sm:$0xff]  ;;  %v1730_v26 = vpack.c.bf16 %v586_v15, %v583_v12  ;;  %v589_v28 = vld [vmem:[%s3270_s4 + $0x2b0] sm:$0xff]  ;;  %v587_v33 = vld [vmem:[%s3270_s4 + $0x2a0] sm:$0xff] }
  0x21   :  { %1713 = vmatpush1.bf16.msra.mxu1 %v1712_v10  ;;  %1625 = vmatpush1.bf16.msra.mxu0 %v1624_v11  ;;  %v102_v5 = vadd.f32 %v101_v59, %v2109_v58  ;;  %v1727_v10 = vpack.c.bf16 %v580_v2, %v577_v62  ;;  %v1644_v11 = vpack.c.bf16 %v578_v4, %v575_v3  ;;  %v588_v19 = vld [vmem:[%s3270_s4 + $0x2a8] sm:$0xff]  ;;  %v594_v36 = vld [vmem:[%s3270_s4 + $0x2d8] sm:$0xff]  ;;  %v2202_v39 = vld [vmem:[%s3271_s0 + $0x140] sm:$0xff] }
  0x22   :  { %1714 = vmatprep.subr.bf16.mxu1 %v3276_v0  ;;  %1627 = vmatprep.subr.bf16.mxu0 %v1626_v13  ;;  %v2149_v13 = vld [vmem:[%s3271_s0 + $0xf8] sm:$0xff]  ;;  %v1648_v27 = vpack.c.bf16 %v584_v17, %v581_v16  ;;  %v2180_v29 = vld [vmem:[%s3271_s0 + $0x128] sm:$0xff]  ;;  %v595_v43 = vld [vmem:[%s3270_s4 + $0x2e0] sm:$0xff] }
  0x23   :  { %v103_v9 = vadd.f32 %v102_v5, %v2118_v63  ;;  %v592_v31 = vld [vmem:[%s3270_s4 + $0x2c8] sm:$0xff]  ;;  %v2211_v44 = vld [vmem:[%s3271_s0 + $0x158] sm:$0xff]  ;;  %v2227_v52 = vld [vmem:[%s3271_s0 + $0x170] sm:$0xff] }
  0x24   :  { %v1733_v41 = vpack.c.bf16 %v592_v31, %v589_v28  ;;  %v596_v49 = vld [vmem:[%s3270_s4 + $0x2e8] sm:$0xff]  ;;  %v603_v54 = vld [vmem:[%s3270_s4 + $0x320] sm:$0xff]  ;;  %v2252_v2 = vld [vmem:[%s3271_s0 + $0x1b8] sm:$0xff] }
  0x25   :  { %1716 = vmatpush1.bf16.msra.mxu1 %v1715_v20  ;;  %1629 = vmatpush1.bf16.msra.mxu0 %v1628_v21  ;;  %v104_v18 = vadd.f32 %v103_v9, %v2140_v8  ;;  %v591_v20 = vld [vmem:[%s3270_s4 + $0x2c0] sm:$0xff]  ;;  %v2171_v21 = vld [vmem:[%s3271_s0 + $0x110] sm:$0xff]  ;;  %v600_v53 = vld [vmem:[%s3270_s4 + $0x308] sm:$0xff] }
  0x26   :  { %1717 = vmatprep.subr.bf16.mxu1 %v3276_v0  ;;  %1631 = vmatprep.subr.bf16.mxu0 %v1630_v25  ;;  %v1650_v30 = vpack.c.bf16 %v591_v20, %v588_v19  ;;  %v2239_v59 = vld [vmem:[%s3271_s0 + $0x188] sm:$0xff]  ;;  %v2246_v62 = vld [vmem:[%s3271_s0 + $0x1a0] sm:$0xff]  ;;  %v2278_v19 = vld [vmem:[%s3272_s1 + $0x38] sm:$0xff] }
  0x27   :  { %v105_v25 = vadd.f32 %v104_v18, %v2149_v13  ;;  %v2266_v16 = vld [vmem:[%s3272_s1 + $0x8] sm:$0xff]  ;;  %v2271_v17 = vld [vmem:[%s3272_s1 + $0x20] sm:$0xff] }
  0x28   :  { %v2295_v31 = vld [vmem:[%s3272_s1 + $0x68] sm:$0xff] }
  0x29   :  { %1719 = vmatpush1.bf16.msra.mxu1 %v1718_v34  ;;  %1633 = vmatpush1.bf16.msra.mxu0 %v1632_v35  ;;  %v590_v34 = vld [vmem:[%s3270_s4 + $0x2b8] sm:$0xff]  ;;  %v106_v35 = vadd.f32 %v105_v25, %v2171_v21 }
  0x2a   :  { %1720 = vmatprep.subr.bf16.mxu1 %v3276_v0  ;;  %1635 = vmatprep.subr.bf16.mxu0 %v1634_v38  ;;  %v597_v38 = vld [vmem:[%s3270_s4 + $0x2f0] sm:$0xff]  ;;  %v1652_v42 = vpack.c.bf16 %v590_v34, %v587_v33 }
  0x2b   :  { %v107_v40 = vadd.f32 %v106_v35, %v2180_v29  ;;  %v1654_v46 = vpack.c.bf16 %v597_v38, %v594_v36  ;;  %v2303_v38 = vld [vmem:[%s3272_s1 + $0x80] sm:$0xff] }
  0x2d   :  { %1722 = vmatpush1.bf16.msra.mxu1 %v1721_v47  ;;  %1637 = vmatpush1.bf16.msra.mxu0 %v1636_v48  ;;  %v598_v47 = vld [vmem:[%s3270_s4 + $0x2f8] sm:$0xff]  ;;  %v593_v48 = vld [vmem:[%s3270_s4 + $0x2d0] sm:$0xff] }
  0x2e   :  { %1723 = vmatprep.subr.bf16.mxu1 %v3276_v0  ;;  %1639 = vmatprep.subr.bf16.mxu0 %v1638_v51  ;;  %v108_v51 = vadd.f32 %v107_v40, %v2202_v39  ;;  %v1736_v56 = vpack.c.bf16 %v598_v47, %v595_v43  ;;  %v1656_v57 = vpack.c.bf16 %v596_v49, %v593_v48  ;;  %v2311_v43 = vld [vmem:[%s3272_s1 + $0x98] sm:$0xff] }
  0x30   :  { %v109_v55 = vadd.f32 %v108_v51, %v2211_v44  ;;  %v2319_v51 = vld [vmem:[%s3272_s1 + $0xb0] sm:$0xff] }
  0x31   :  { %1725 = vmatpush1.bf16.msra.mxu1 %v1724_v60  ;;  %1641 = vmatpush1.bf16.msra.mxu0 %v1640_v61  ;;  %v1658_v61 = vpack.c.bf16 %v603_v54, %v600_v53 }
  0x32   :  { %1726 = vmatprep.subr.bf16.mxu1 %v3276_v0  ;;  %1643 = vmatprep.subr.bf16.mxu0 %v1642_v1  ;;  %v110_v60 = vadd.f32 %v109_v55, %v2227_v52 }
  0x34   :  { %v111_v1 = vadd.f32 %v110_v60, %v2239_v59 }
  0x35   :  { %1728 = vmatpush1.bf16.msra.mxu1 %v1727_v10  ;;  %1645 = vmatpush1.bf16.msra.mxu0 %v1644_v11 }
  0x36   :  { %1729 = vmatprep.subr.bf16.mxu1 %v3276_v0  ;;  %1647 = vmatprep.subr.bf16.mxu0 %v1646_v14  ;;  %v112_v3 = vadd.f32 %v111_v1, %v2246_v62 }
  0x38   :  { %v113_v4 = vadd.f32 %v112_v3, %v2252_v2 }
  0x39   :  { %1731 = vmatpush1.bf16.msra.mxu1 %v1730_v26  ;;  %1649 = vmatpush1.bf16.msra.mxu0 %v1648_v27  ;;  %v2287_v27 = vld [vmem:[%s3272_s1 + $0x50] sm:$0xff] }
  0x3a   :  { %1732 = vmatprep.subr.bf16.mxu1 %v3276_v0  ;;  %1651 = vmatprep.subr.bf16.mxu0 %v1650_v30  ;;  %v114_v5 = vrot.slane %v113_v4, 4 }
  0x3c   :  { %v115_v6 = vadd.f32 %v114_v5, %v113_v4  ;;  %v2335_v4 = vld [vmem:[%s3272_s1 + $0xe0] sm:$0xff] }
  0x3d   :  { %1734 = vmatpush1.bf16.msra.mxu1 %v1733_v41  ;;  %1653 = vmatpush1.bf16.msra.mxu0 %v1652_v42 }
  0x3e   :  { %1735 = vmatprep.subr.bf16.mxu1 %v3276_v0  ;;  %1655 = vmatprep.subr.bf16.mxu0 %v1654_v46  ;;  %v116_v7 = vrot.slane %v115_v6, 2 }
  0x40   :  { %v117_v9 = vadd.f32 %v116_v7, %v115_v6 }
  0x41   :  { %1737 = vmatpush1.bf16.msra.mxu1 %v1736_v56  ;;  %1657 = vmatpush1.bf16.msra.mxu0 %v1656_v57  ;;  %v2327_v57 = vld [vmem:[%s3272_s1 + $0xc8] sm:$0xff] }
  0x42   :  { %1738 = vmatprep.subr.bf16.mxu1 %v3276_v0  ;;  %1659 = vmatprep.subr.bf16.mxu0 %v1658_v61  ;;  %v118_v10 = vrot.slane %v117_v9, 1 }
  0x44   :  { %v119_v11 = vadd.f32 %v118_v10, %v117_v9  ;;  %v2343_v10 = vld [vmem:[%s3272_s1 + $0xf8] sm:$0xff] }
  0x46   :  { %v2257_v12 = vmul.f32 0.020408163, %v119_v11 }
  0x48   :  { %v121_v14 = vsub.f32 %v2014_v22, %v2257_v12  ;;  %v122_v15 = vsub.f32 %v2019_v23, %v2257_v12  ;;  %v123_v18 = vsub.f32 %v2024_v24, %v2257_v12  ;;  %v124_v20 = vsub.f32 %v2047_v32, %v2257_v12 }
  0x49   :  { %v125_v28 = vsub.f32 %v2056_v37, %v2257_v12  ;;  %v126_v33 = vsub.f32 %v2078_v45, %v2257_v12  ;;  %v127_v40 = vsub.f32 %v2087_v50, %v2257_v12  ;;  %v128_v46 = vsub.f32 %v2109_v58, %v2257_v12 }
  0x4a   :  { %v140_v25 = vmul.f32 %v121_v14, %v2266_v16  ;;  %v141_v26 = vmul.f32 %v122_v15, %v2271_v17  ;;  %v142_v30 = vmul.f32 %v123_v18, %v2278_v19  ;;  %v143_v34 = vmul.f32 %v124_v20, %v2287_v27  ;;  %v2351_v20 = vld [vmem:[%s3272_s1 + $0x110] sm:$0xff] }
  0x4b   :  { %v144_v41 = vmul.f32 %v125_v28, %v2295_v31  ;;  %v145_v47 = vmul.f32 %v126_v33, %v2303_v38  ;;  %v129_v53 = vsub.f32 %v2118_v63, %v2257_v12  ;;  %v146_v54 = vmul.f32 %v127_v40, %v2311_v43  ;;  %v2359_v33 = vld [vmem:[%s3272_s1 + $0x128] sm:$0xff] }
  0x4c   :  { %v159_v35 = vmul.f32 %v140_v25, %v140_v25  ;;  %v160_v36 = vmul.f32 %v141_v26, %v141_v26  ;;  %v161_v42 = vmul.f32 %v142_v30, %v142_v30  ;;  %v162_v48 = vmul.f32 %v143_v34, %v143_v34 }
  0x4d   :  { %v163_v55 = vmul.f32 %v144_v41, %v144_v41  ;;  %v130_v60 = vsub.f32 %v2140_v8, %v2257_v12  ;;  %v147_v61 = vmul.f32 %v128_v46, %v2319_v51  ;;  %v164_v1 = vmul.f32 %v145_v47, %v145_v47  ;;  %v2367_v41 = vld [vmem:[%s3272_s1 + $0x140] sm:$0xff] }
  0x4e   :  { %v178_v49 = vadd.f32 %v160_v36, %v159_v35  ;;  %v131_v5 = vsub.f32 %v2149_v13, %v2257_v12  ;;  %v148_v6 = vmul.f32 %v129_v53, %v2327_v57  ;;  %v165_v7 = vmul.f32 %v146_v54, %v146_v54 }
  0x4f   :  { %v132_v11 = vsub.f32 %v2171_v21, %v2257_v12  ;;  %v149_v14 = vmul.f32 %v130_v60, %v2335_v4  ;;  %v166_v15 = vmul.f32 %v147_v61, %v147_v61  ;;  %v133_v25 = vsub.f32 %v2180_v29, %v2257_v12  ;;  %v2383_v60 = vld [vmem:[%s3272_s1 + $0x170] sm:$0xff] }
  0x50   :  { %v179_v56 = vadd.f32 %v178_v49, %v161_v42  ;;  %v150_v26 = vmul.f32 %v131_v5, %v2343_v10  ;;  %v167_v28 = vmul.f32 %v148_v6, %v148_v6  ;;  %v134_v34 = vsub.f32 %v2202_v39, %v2257_v12  ;;  %v2375_v49 = vld [vmem:[%s3272_s1 + $0x158] sm:$0xff]  ;;  %v2391_v6 = vld [vmem:[%s3272_s1 + $0x188] sm:$0xff] }
  0x51   :  { %v151_v35 = vmul.f32 %v132_v11, %v2351_v20  ;;  %v168_v36 = vmul.f32 %v149_v14, %v149_v14  ;;  %v135_v42 = vsub.f32 %v2211_v44, %v2257_v12  ;;  %v152_v46 = vmul.f32 %v133_v25, %v2359_v33  ;;  %3279 = vst [vmem:[#allocation3_spill] sm:$0xff] %v2391_v6 }
  0x52   :  { %v180_v3 = vadd.f32 %v179_v56, %v162_v48  ;;  %v169_v47 = vmul.f32 %v150_v26, %v150_v26  ;;  %v136_v53 = vsub.f32 %v2227_v52, %v2257_v12  ;;  %v153_v54 = vmul.f32 %v134_v34, %v2367_v41 }
  0x53   :  { %v137_v61 = vsub.f32 %v2239_v59, %v2257_v12 }
  0x54   :  { %v181_v9 = vadd.f32 %v180_v3, %v163_v55  ;;  %v170_v55 = vmul.f32 %v151_v35, %v151_v35  ;;  %v171_v3 = vmul.f32 %v152_v46, %v152_v46  ;;  %v172_v11 = vmul.f32 %v153_v54, %v153_v54 }
  0x55   :  { %v156_v25 = vmul.f32 %v137_v61, %v2391_v6 }
  0x56   :  { %v182_v18 = vadd.f32 %v181_v9, %v164_v1  ;;  %v154_v1 = vmul.f32 %v135_v42, %v2375_v49  ;;  %v155_v9 = vmul.f32 %v136_v53, %v2383_v60 }
  0x57   :  { %v175_v42 = vmul.f32 %v156_v25, %v156_v25 }
  0x58   :  { %v183_v30 = vadd.f32 %v182_v18, %v165_v7  ;;  %v138_v7 = vsub.f32 %v2246_v62, %v2257_v12  ;;  %v139_v18 = vsub.f32 %v2252_v2, %v2257_v12  ;;  %v173_v26 = vmul.f32 %v154_v1, %v154_v1 }
  0x59   :  { %v174_v35 = vmul.f32 %v155_v9, %v155_v9  ;;  %v210_v9 = vlaneseq }
  0x5a   :  { %v184_v40 = vadd.f32 %v183_v30, %v166_v15  ;;  %v2399_v15 = vld [vmem:[%s3272_s1 + $0x1a0] sm:$0xff]  ;;  %v2407_v30 = vld [vmem:[%s3272_s1 + $0x1b8] sm:$0xff] }
  0x5b   :  { %v157_v34 = vmul.f32 %v138_v7, %v2399_v15 }
  0x5c   :  { %v185_v48 = vadd.f32 %v184_v40, %v167_v28  ;;  %v158_v40 = vmul.f32 %v139_v18, %v2407_v30  ;;  %v203_v18 = vld [vmem:[%s3273_s2] sm:$0x1] }
  0x5e   :  { %v186_v56 = vadd.f32 %v185_v48, %v168_v36  ;;  %v177_v53 = vmul.f32 %v158_v40, %v158_v40 }
  0x60   :  { %v187_v5 = vadd.f32 %v186_v56, %v169_v47  ;;  %v176_v47 = vmul.f32 %v157_v34, %v157_v34  ;;  %v207_v34 = vld [vmem:[%s3274_s3] sm:$0x1] }
  0x62   :  { %v188_v14 = vadd.f32 %v187_v5, %v170_v55 }
  0x64   :  { %v189_v28 = vadd.f32 %v188_v14, %v171_v3 }
  0x66   :  { %v190_v36 = vadd.f32 %v189_v28, %v172_v11  ;;  %v211_v11 = vshrl.u32 %v210_v9, 7 }
  0x68   :  { %v191_v46 = vadd.f32 %v190_v36, %v173_v26  ;;  %v212_v25 = vsub.s32 0, %v211_v11  ;;  %v23_v36 = vld [vmem:[%s3271_s0 + $0x18] sm:$0xff] }
  0x6a   :  { %v192_v48 = vadd.f32 %v191_v46, %v174_v35  ;;  %v20_v35 = vld [vmem:[%s3271_s0] sm:$0xff] }
  0x6c   :  { %v193_v54 = vadd.f32 %v192_v48, %v175_v42  ;;  %v26_v48 = vld [vmem:[%s3271_s0 + $0x30] sm:$0xff] }
  0x6e   :  { %v194_v55 = vadd.f32 %v193_v54, %v176_v47 }
  0x70   :  { %v195_v56 = vadd.f32 %v194_v55, %v177_v53  ;;  %v604_v55 = vld [vmem:[%s3270_s4 + $0x328] sm:$0xff] }
  0x72   :  { %v196_v61 = vrot.slane %v195_v56, 4 }
  0x74   :  { %v197_v1 = vadd.f32 %v196_v61, %v195_v56  ;;  %v29_v61 = vld [vmem:[%s3271_s0 + $0x48] sm:$0xff] }
  0x76   :  { %v198_v3 = vrot.slane %v197_v1, 2 }
  0x78   :  { %v199_v5 = vadd.f32 %v198_v3, %v197_v1 }
  0x7a   :  { %v200_v14 = vrot.slane %v199_v5, 1 }
  0x7c   :  { %v201_v0 = vadd.f32 %v200_v14, %v199_v5  ;;  %v389_v14 = vld [vmem:[%s3272_s1] sm:$0xff] }
  0x7e   :  { %v202_v6 = vmul.f32 0.020408163, %v201_v0 }
  0x80   :  { %v204_v7 = vadd.f32 1e-05, %v202_v6 }
  0x82   :  { %1797 = vrsqrt.f32 %v204_v7 }
  0x8c   :  { %v1798_v26 = vpop.eup %1797 }
  0x8d   :  { %v206_v28 = vmul.f32 %v1798_v26, %v203_v18  ;;  %v602_v26 = vld [vmem:[%s3270_s4 + $0x318] sm:$0xff] }
  0x8f   :  { %v208_v0 = vmul.f32 %v206_v28, %v2257_v12  ;;  %v2421_v6 = vrot.slane %v206_v28, %v212_v25 }
  0x91   :  { %v209_v40 = vsub.f32 %v207_v34, %v208_v0  ;;  %v215_v42 = vmul.f32 %v2421_v6, %v2014_v22  ;;  %v214_v46 = vmul.f32 %v2421_v6, %v20_v35  ;;  %v218_v47 = vmul.f32 %v2421_v6, %v2019_v23  ;;  %v601_v22 = vld [vmem:[%s3270_s4 + $0x310] sm:$0xff] }
  0x92   :  { %v217_v12 = vmul.f32 %v2421_v6, %v23_v36  ;;  %v221_v53 = vmul.f32 %v2421_v6, %v2024_v24  ;;  %v220_v23 = vmul.f32 %v2421_v6, %v26_v48  ;;  %v224_v56 = vmul.f32 %v2421_v6, %v2047_v32  ;;  %v606_v36 = vld [vmem:[%s3270_s4 + $0x338] sm:$0xff] }
  0x93   :  { %v2437_v54 = vrot.slane %v209_v40, %v212_v25  ;;  %v1739_v7 = vpack.c.bf16 %v604_v55, %v601_v22  ;;  %v599_v25 = vld [vmem:[%s3270_s4 + $0x300] sm:$0xff]  ;;  %v223_v28 = vmul.f32 %v2421_v6, %v29_v61  ;;  %v609_v40 = vld [vmem:[%s3270_s4 + $0x350] sm:$0xff] }
  0x94   :  { %v32_v22 = vld [vmem:[%s3271_s0 + $0x60] sm:$0xff]  ;;  %v1660_v55 = vpack.c.bf16 %v602_v26, %v599_v25  ;;  %v230_v25 = vmul.f32 %v2421_v6, %v2078_v45  ;;  %v613_v26 = vld [vmem:[%s3270_s4 + $0x370] sm:$0xff] }
  0x95   :  { %v276_v24 = vadd.f32 %v2437_v54, %v215_v42  ;;  %v275_v1 = vadd.f32 %v2437_v54, %v214_v46  ;;  %v279_v3 = vadd.f32 %v2437_v54, %v218_v47  ;;  %v278_v5 = vadd.f32 %v2437_v54, %v217_v12  ;;  %v392_v12 = vld [vmem:[%s3272_s1 + $0x18] sm:$0xff]  ;;  %v611_v45 = vld [vmem:[%s3270_s4 + $0x360] sm:$0xff] }
  0x96   :  { %v282_v9 = vadd.f32 %v2437_v54, %v221_v53  ;;  %v281_v35 = vadd.f32 %v2437_v54, %v220_v23  ;;  %v285_v0 = vadd.f32 %v2437_v54, %v224_v56  ;;  %v227_v42 = vmul.f32 %v2421_v6, %v2056_v37  ;;  %v607_v23 = vld [vmem:[%s3270_s4 + $0x340] sm:$0xff]  ;;  %v610_v37 = vld [vmem:[%s3270_s4 + $0x358] sm:$0xff]  ;;  %v608_v56 = vld [vmem:[%s3270_s4 + $0x348] sm:$0xff] }
  0x97   :  { %v333_v32 = vmax.f32 %v276_v24, 0.0  ;;  %v332_v11 = vmax.f32 %v275_v1, 0.0  ;;  %v336_v18 = vmax.f32 %v279_v3, 0.0  ;;  %v335_v34 = vmax.f32 %v278_v5, 0.0  ;;  %v612_v5 = vld [vmem:[%s3270_s4 + $0x368] sm:$0xff] }
  0x98   :  { %v339_v53 = vmax.f32 %v282_v9, 0.0  ;;  %v338_v24 = vmax.f32 %v281_v35, 0.0  ;;  %v284_v1 = vadd.f32 %v2437_v54, %v223_v28  ;;  %v226_v3 = vmul.f32 %v2421_v6, %v32_v22  ;;  %v614_v35 = vld [vmem:[%s3270_s4 + $0x378] sm:$0xff]  ;;  %v621_v22 = vld [vmem:[%s3270_s4 + $0x3b0] sm:$0xff] }
  0x99   :  { %v447_v46 = vmul.f32 %v333_v32, %v2266_v16  ;;  %v446_v47 = vmul.f32 %v389_v14, %v332_v11  ;;  %v450_v48 = vmul.f32 %v336_v18, %v2271_v17  ;;  %v1662_v16 = vpack.c.bf16 %v609_v40, %v606_v36  ;;  %v605_v17 = vld [vmem:[%s3270_s4 + $0x330] sm:$0xff]  ;;  %v615_v14 = vld [vmem:[%s3270_s4 + $0x380] sm:$0xff] }
  0x9a   :  { %v449_v61 = vmul.f32 %v392_v12, %v335_v34  ;;  %v453_v9 = vmul.f32 %v339_v53, %v2278_v19  ;;  %v395_v32 = vld [vmem:[%s3272_s1 + $0x30] sm:$0xff]  ;;  %v342_v11 = vmax.f32 %v285_v0, 0.0  ;;  %v288_v18 = vadd.f32 %v2437_v54, %v227_v42  ;;  %v616_v34 = vld [vmem:[%s3270_s4 + $0x388] sm:$0xff]  ;;  %v2530_v40 = vld [vmem:[%s3270_s4 + $0x3a0] sm:$0xff] }
  0x9b   :  { %711 = vmatprep.mubr.f32.mxu0 %v447_v46  ;;  %1069 = vmatprep.mubr.f32.mxu1 %v447_v46  ;;  %v1742_v19 = vpack.c.bf16 %v610_v37, %v607_v23  ;;  %v1664_v28 = vpack.c.bf16 %v608_v56, %v605_v17  ;;  %v3280_v0 = vmov 0.0|0.0   ;;  %v1666_v36 = vpack.c.bf16 %v615_v14, %v612_v5  ;;  %v2535_v42 = vld [vmem:[%s3270_s4 + $0x3b8] sm:$0xff]  ;;  %v2553_v23 = vld [vmem:[%s3270_s4 + $0x3a8] sm:$0xff] }
  0x9c   :  { %712 = vmatmul.mubr.f32.vlgmr.msra.gmra.mrb[0].mxu0 %v446_v47  ;;  %1070 = vmatmul.mubr.f32.vlgmr.msra.gmra.mrb[0].mxu1 %v446_v47  ;;  %v618_v46 = vld [vmem:[%s3270_s4 + $0x398] sm:$0xff]  ;;  %v452_v47 = vmul.f32 %v395_v32, %v338_v24  ;;  %v287_v12 = vadd.f32 %v2437_v54, %v226_v3  ;;  %v456_v37 = vmul.f32 %v342_v11, %v2287_v27  ;;  %v345_v17 = vmax.f32 %v288_v18, 0.0  ;;  %v38_v24 = vld [vmem:[%s3271_s0 + $0x90] sm:$0xff]  ;;  %v41_v27 = vld [vmem:[%s3271_s0 + $0xa8] sm:$0xff] }
  0x9d   :  { %1740 = vmatpush3.bf16.msra.mxu1 %v1739_v7  ;;  %717 = vmatprep.mubr.f32.mxu0 %v450_v48  ;;  %v35_v7 = vld [vmem:[%s3271_s0 + $0x78] sm:$0xff]  ;;  %v291_v56 = vadd.f32 %v2437_v54, %v230_v25  ;;  %v1668_v3 = vpack.c.bf16 %v614_v35, %v611_v45  ;;  %v1748_v5 = vpack.c.bf16 %v2535_v42, %v2530_v40  ;;  %v2581_v32 = vld [vmem:[%s3270_s4 + $0x3e8] sm:$0xff]  ;;  %v401_v45 = vld [vmem:[%s3272_s1 + $0x60] sm:$0xff] }
  0x9e   :  { %1074 = vmatprep.mubr.f32.mxu1 %v450_v48  ;;  %1661 = vmatpush1.bf16.msra.mxu0 %v1660_v55  ;;  %v341_v48 = vmax.f32 %v284_v1, 0.0  ;;  %v229_v53 = vmul.f32 %v2421_v6, %v35_v7  ;;  %v2548_v55 = vld [vmem:[%s3270_s4 + $0x390] sm:$0xff]  ;;  %v1745_v1 = vpack.c.bf16 %v616_v34, %v613_v26  ;;  %v1670_v14 = vpack.c.bf16 %v621_v22, %v618_v46  ;;  %v44_v7 = vld [vmem:[%s3271_s0 + $0xc0] sm:$0xff]  ;;  %v47_v42 = vld [vmem:[%s3271_s0 + $0xd8] sm:$0xff] }
  0x9f   :  { %1741 = vmatprep.subr.bf16.mxu1 %v3280_v0  ;;  %1663 = vmatprep.subr.bf16.mxu0 %v1662_v16  ;;  %v398_v16 = vld [vmem:[%s3272_s1 + $0x48] sm:$0xff]  ;;  %v344_v18 = vmax.f32 %v287_v12, 0.0  ;;  %v232_v26 = vmul.f32 %v2421_v6, %v38_v24  ;;  %v459_v34 = vmul.f32 %v345_v17, %v2295_v31  ;;  %v348_v35 = vmax.f32 %v291_v56, 0.0  ;;  %v2630_v22 = vld [vmem:[%s3270_s4 + $0x400] sm:$0xff]  ;;  %v630_v56 = vld [vmem:[%s3270_s4 + $0x3f8] sm:$0xff] }
  0xa0   :  { %718 = vmatmul.mubr.f32.gmra.mrb[2].mxu0 %v449_v61  ;;  %1075 = vmatmul.mubr.f32.gmra.mrb[2].mxu1 %v449_v61  ;;  %v233_v61 = vmul.f32 %v2421_v6, %v2087_v50  ;;  %v1672_v50 = vpack.c.bf16 %v2553_v23, %v2548_v55  ;;  %v455_v11 = vmul.f32 %v398_v16, %v341_v48  ;;  %v2616_v48 = vld [vmem:[%s3270_s4 + $0x3c0] sm:$0xff]  ;;  %v2635_v55 = vld [vmem:[%s3270_s4 + $0x418] sm:$0xff] }
  0xa1   :  { %723 = vmatprep.mubr.f32.mxu0 %v453_v9  ;;  %1079 = vmatprep.mubr.f32.mxu1 %v453_v9  ;;  %v2576_v9 = vld [vmem:[%s3270_s4 + $0x3d0] sm:$0xff]  ;;  %v2584_v25 = vadd.f32 %v2437_v54, %v229_v53  ;;  %v236_v40 = vmul.f32 %v2421_v6, %v2109_v58  ;;  %v235_v46 = vmul.f32 %v2421_v6, %v41_v27  ;;  %v2621_v58 = vld [vmem:[%s3270_s4 + $0x3d8] sm:$0xff] }
  0xa2   :  { %1743 = vmatpush3.bf16.msra.mxu1 %v1742_v19  ;;  %1665 = vmatpush1.bf16.msra.mxu0 %v1664_v28  ;;  %v624_v19 = vld [vmem:[%s3270_s4 + $0x3c8] sm:$0xff]  ;;  %v627_v28 = vld [vmem:[%s3270_s4 + $0x3e0] sm:$0xff]  ;;  %v239_v31 = vmul.f32 %v2421_v6, %v2118_v63  ;;  %v238_v12 = vmul.f32 %v2421_v6, %v44_v7  ;;  %v242_v63 = vmul.f32 %v2421_v6, %v2140_v8  ;;  %v404_v8 = vld [vmem:[%s3272_s1 + $0x78] sm:$0xff] }
  0xa3   :  { %1744 = vmatprep.subr.bf16.mxu1 %v3280_v0  ;;  %1667 = vmatprep.subr.bf16.mxu0 %v1666_v36  ;;  %v2601_v36 = vadd.f32 %v2437_v54, %v233_v61  ;;  %v1674_v53 = vpack.c.bf16 %v627_v28, %v624_v19  ;;  %v458_v23 = vmul.f32 %v401_v45, %v344_v18  ;;  %v633_v61 = vld [vmem:[%s3270_s4 + $0x410] sm:$0xff]  ;;  %v2684_v7 = vld [vmem:[%s3270_s4 + $0x448] sm:$0xff]  ;;  %v2702_v45 = vld [vmem:[%s3270_s4 + $0x420] sm:$0xff] }
  0xa4   :  { %724 = vmatmul.mubr.f32.gmra.mrb[4].mxu0 %v452_v47  ;;  %1080 = vmatmul.mubr.f32.gmra.mrb[4].mxu1 %v452_v47  ;;  %v1751_v47 = vpack.c.bf16 %v2581_v32, %v2576_v9  ;;  %v2642_v16 = vadd.f32 %v2437_v54, %v232_v26  ;;  %v241_v17 = vmul.f32 %v2421_v6, %v47_v42  ;;  %v2689_v19 = vld [vmem:[%s3270_s4 + $0x428] sm:$0xff] }
  0xa5   :  { %729 = vmatprep.mubr.f32.mxu0 %v456_v37  ;;  %1084 = vmatprep.mubr.f32.mxu1 %v456_v37  ;;  %v347_v37 = vmax.f32 %v2584_v25, 0.0  ;;  %v462_v24 = vmul.f32 %v348_v35, %v2303_v38  ;;  %v1676_v27 = vpack.c.bf16 %v2621_v58, %v2616_v48  ;;  %v2671_v38 = vld [vmem:[%s3270_s4 + $0x430] sm:$0xff]  ;;  %v2674_v18 = vadd.f32 %v2437_v54, %v235_v46  ;;  %v2707_v35 = vld [vmem:[%s3270_s4 + $0x438] sm:$0xff]  ;;  %v53_v9 = vld [vmem:[%s3271_s0 + $0x108] sm:$0xff] }
  0xa6   :  { %1746 = vmatpush3.bf16.msra.mxu1 %v1745_v1  ;;  %1669 = vmatpush1.bf16.msra.mxu0 %v1668_v3  ;;  %v351_v1 = vmax.f32 %v2601_v36, 0.0  ;;  %v2654_v3 = vadd.f32 %v2437_v54, %v236_v40  ;;  %v2677_v25 = vadd.f32 %v2437_v54, %v239_v31  ;;  %v1754_v26 = vpack.c.bf16 %v2635_v55, %v2630_v22  ;;  %v2712_v36 = vld [vmem:[%s3270_s4 + $0x460] sm:$0xff]  ;;  %v2721_v48 = vld [vmem:[%s3270_s4 + $0x478] sm:$0xff]  ;;  %v22_v55 = vld [vmem:[%s3271_s0 + $0x10] sm:$0xff] }
  0xa7   :  { %1747 = vmatprep.subr.bf16.mxu1 %v3280_v0  ;;  %1671 = vmatprep.subr.bf16.mxu0 %v1670_v14  ;;  %v2661_v14 = vld [vmem:[%s3270_s4 + $0x3f0] sm:$0xff]  ;;  %v303_v28 = vadd.f32 %v2437_v54, %v242_v63  ;;  %v461_v40 = vmul.f32 %v404_v8, %v347_v37  ;;  %v350_v42 = vmax.f32 %v2642_v16, 0.0  ;;  %v302_v46 = vadd.f32 %v2437_v54, %v241_v17  ;;  %v2726_v58 = vld [vmem:[%s3270_s4 + $0x458] sm:$0xff] }
  0xa8   :  { %730 = vmatmul.mubr.f32.gmra.mrb[6].mxu0 %v455_v11  ;;  %1085 = vmatmul.mubr.f32.gmra.mrb[6].mxu1 %v455_v11  ;;  %v2666_v11 = vld [vmem:[%s3270_s4 + $0x408] sm:$0xff]  ;;  %v245_v31 = vmul.f32 %v2421_v6, %v2149_v13  ;;  %v465_v63 = vmul.f32 %v351_v1, %v2311_v43  ;;  %v407_v13 = vld [vmem:[%s3272_s1 + $0x90] sm:$0xff]  ;;  %v1757_v37 = vpack.c.bf16 %v2684_v7, %v2671_v38  ;;  %v353_v16 = vmax.f32 %v2674_v18, 0.0 }
  0xa9   :  { %735 = vmatprep.mubr.f32.mxu0 %v459_v34  ;;  %1089 = vmatprep.mubr.f32.mxu1 %v459_v34  ;;  %v1678_v34 = vpack.c.bf16 %v633_v61, %v630_v56  ;;  %v2745_v8 = vld [vmem:[%s3270_s4 + $0x450] sm:$0xff]  ;;  %v2750_v43 = vld [vmem:[%s3270_s4 + $0x468] sm:$0xff]  ;;  %v357_v17 = vmax.f32 %v2677_v25, 0.0  ;;  %v1760_v32 = vpack.c.bf16 %v2721_v48, %v2712_v36  ;;  %v359_v38 = vmax.f32 %v302_v46, 0.0  ;;  %v68_v25 = vld [vmem:[%s3271_s0 + $0x180] sm:$0xff] }
  0xaa   :  { %1749 = vmatpush3.bf16.msra.mxu1 %v1748_v5  ;;  %1673 = vmatpush1.bf16.msra.mxu0 %v1672_v50  ;;  %v2694_v5 = vld [vmem:[%s3270_s4 + $0x440] sm:$0xff]  ;;  %v299_v50 = vadd.f32 %v2437_v54, %v238_v12  ;;  %v2731_v12 = vld [vmem:[%s3270_s4 + $0x470] sm:$0xff]  ;;  %v410_v1 = vld [vmem:[%s3272_s1 + $0xa8] sm:$0xff]  ;;  %v306_v18 = vadd.f32 %v2437_v54, %v245_v31  ;;  %v1688_v7 = vpack.c.bf16 %v2750_v43, %v2745_v8 }
  0xab   :  { %1750 = vmatprep.subr.bf16.mxu1 %v3280_v0  ;;  %1675 = vmatprep.subr.bf16.mxu0 %v1674_v53  ;;  %v354_v53 = vmax.f32 %v2654_v3, 0.0  ;;  %v50_v56 = vld [vmem:[%s3271_s0 + $0xf0] sm:$0xff]  ;;  %v1682_v61 = vpack.c.bf16 %v2694_v5, %v2689_v19  ;;  %v416_v5 = vld [vmem:[%s3272_s1 + $0xd8] sm:$0xff]  ;;  %v266_v31 = vmul.f32 %v2421_v6, %v2246_v62  ;;  %v25_v62 = vld [vmem:[%s3271_s0 + $0x28] sm:$0xff]  ;;  %v269_v8 = vmul.f32 %v2421_v6, %v2252_v2 }
  0xac   :  { %736 = vmatmul.mubr.f32.gmra.mrb[8].mxu0 %v458_v23  ;;  %1090 = vmatmul.mubr.f32.gmra.mrb[8].mxu1 %v458_v23  ;;  %v1680_v23 = vpack.c.bf16 %v2666_v11, %v2661_v14  ;;  %v356_v3 = vmax.f32 %v299_v50, 0.0  ;;  %v360_v14 = vmax.f32 %v303_v28, 0.0  ;;  %v413_v11 = vld [vmem:[%s3272_s1 + $0xc0] sm:$0xff]  ;;  %v244_v50 = vmul.f32 %v2421_v6, %v50_v56 }
  0xad   :  { %741 = vmatprep.mubr.f32.mxu0 %v462_v24  ;;  %1094 = vmatprep.mubr.f32.mxu1 %v462_v24  ;;  %v1684_v24 = vpack.c.bf16 %v2707_v35, %v2702_v45  ;;  %v468_v19 = vmul.f32 %v354_v53, %v2319_v51  ;;  %v248_v28 = vmul.f32 %v2421_v6, %v2171_v21  ;;  %v28_v2 = vld [vmem:[%s3271_s0 + $0x40] sm:$0xff] }
  0xae   :  { %1752 = vmatpush3.bf16.msra.mxu1 %v1751_v47  ;;  %1677 = vmatpush1.bf16.msra.mxu0 %v1676_v27  ;;  %v1686_v47 = vpack.c.bf16 %v2731_v12, %v2726_v58  ;;  %v464_v27 = vmul.f32 %v407_v13, %v350_v42  ;;  %v467_v45 = vmul.f32 %v410_v1, %v353_v16  ;;  %v56_v13 = vld [vmem:[%s3271_s0 + $0x120] sm:$0xff]  ;;  %v34_v1 = vld [vmem:[%s3271_s0 + $0x70] sm:$0xff] }
  0xaf   :  { %1753 = vmatprep.subr.bf16.mxu1 %v3280_v0  ;;  %1679 = vmatprep.subr.bf16.mxu0 %v1678_v34  ;;  %v71_v34 = vld [vmem:[%s3271_s0 + $0x198] sm:$0xff]  ;;  %v471_v35 = vmul.f32 %v357_v17, %v2327_v57  ;;  %v470_v51 = vmul.f32 %v413_v11, %v356_v3  ;;  %v2800_v42 = vmul.f32 %v360_v14, %v2335_v4  ;;  %v363_v57 = vmax.f32 %v306_v18, 0.0  ;;  %v74_v4 = vld [vmem:[%s3271_s0 + $0x1b0] sm:$0xff]  ;;  %v37_v3 = vld [vmem:[%s3271_s0 + $0x88] sm:$0xff] }
  0xb0   :  { %742 = vmatmul.mubr.f32.gmra.mrb[10].mxu0 %v461_v40  ;;  %1095 = vmatmul.mubr.f32.gmra.mrb[10].mxu1 %v461_v40  ;;  %v247_v40 = vmul.f32 %v2421_v6, %v53_v9  ;;  %v262_v21 = vmul.f32 %v2421_v6, %v68_v25  ;;  %v2804_v46 = vmul.f32 %v416_v5, %v359_v38  ;;  %v59_v17 = vld [vmem:[%s3271_s0 + $0x138] sm:$0xff] }
  0xb1   :  { %747 = vmatprep.mubr.f32.mxu0 %v465_v63  ;;  %1099 = vmatprep.mubr.f32.mxu1 %v465_v63  ;;  %v265_v22 = vmul.f32 %v2421_v6, %v71_v34  ;;  %v2817_v58 = vadd.f32 %v2437_v54, %v248_v28  ;;  %v251_v63 = vmul.f32 %v2421_v6, %v2180_v29  ;;  %v43_v5 = vld [vmem:[%s3271_s0 + $0xb8] sm:$0xff] }
  0xb2   :  { %1755 = vmatpush3.bf16.msra.mxu1 %v1754_v26  ;;  %1681 = vmatpush1.bf16.msra.mxu0 %v1680_v23  ;;  %v305_v26 = vadd.f32 %v2437_v54, %v244_v50  ;;  %v2820_v12 = vadd.f32 %v2437_v54, %v262_v21  ;;  %v2831_v53 = vadd.f32 %v2437_v54, %v266_v31  ;;  %v422_v50 = vld [vmem:[%s3272_s1 + $0x108] sm:$0xff] }
  0xb3   :  { %1756 = vmatprep.subr.bf16.mxu1 %v3280_v0  ;;  %1683 = vmatprep.subr.bf16.mxu0 %v1682_v61  ;;  %v2834_v23 = vadd.f32 %v2437_v54, %v265_v22  ;;  %v268_v29 = vmul.f32 %v2421_v6, %v74_v4  ;;  %v216_v43 = vmul.f32 %v2421_v6, %v22_v55  ;;  %v366_v9 = vmax.f32 %v2817_v58, 0.0  ;;  %v62_v55 = vld [vmem:[%s3271_s0 + $0x150] sm:$0xff]  ;;  %v49_v58 = vld [vmem:[%s3271_s0 + $0xe8] sm:$0xff] }
  0xb4   :  { %748 = vmatmul.mubr.f32.gmra.mrb[12].mxu0 %v464_v27  ;;  %1100 = vmatmul.mubr.f32.gmra.mrb[12].mxu1 %v464_v27  ;;  %v308_v16 = vadd.f32 %v2437_v54, %v247_v40  ;;  %v250_v56 = vmul.f32 %v2421_v6, %v56_v13  ;;  %v2852_v61 = vadd.f32 %v2437_v54, %v269_v8  ;;  %v362_v14 = vmax.f32 %v305_v26, 0.0  ;;  %v55_v8 = vld [vmem:[%s3271_s0 + $0x118] sm:$0xff] }
  0xb5   :  { %753 = vmatprep.mubr.f32.mxu0 %v468_v19  ;;  %1104 = vmatprep.mubr.f32.mxu1 %v468_v19  ;;  %v2873_v27 = vadd.f32 %v2437_v54, %v216_v43  ;;  %v2876_v11 = vadd.f32 %v2437_v54, %v251_v63  ;;  %v253_v38 = vmul.f32 %v2421_v6, %v59_v17  ;;  %v40_v19 = vld [vmem:[%s3271_s0 + $0xa0] sm:$0xff]  ;;  %v61_v43 = vld [vmem:[%s3271_s0 + $0x148] sm:$0xff] }
  0xb6   :  { %1758 = vmatpush3.bf16.msra.mxu1 %v1757_v37  ;;  %1685 = vmatpush1.bf16.msra.mxu0 %v1684_v24  ;;  %v477_v37 = vmul.f32 %v363_v57, %v2343_v10  ;;  %v2855_v10 = vadd.f32 %v2437_v54, %v268_v29  ;;  %v31_v24 = vld [vmem:[%s3271_s0 + $0x58] sm:$0xff]  ;;  %v222_v25 = vmul.f32 %v2421_v6, %v28_v2  ;;  %v365_v36 = vmax.f32 %v308_v16, 0.0  ;;  %v58_v29 = vld [vmem:[%s3271_s0 + $0x130] sm:$0xff] }
  0xb7   :  { %1759 = vmatprep.subr.bf16.mxu1 %v3280_v0  ;;  %1687 = vmatprep.subr.bf16.mxu0 %v1686_v47  ;;  %v219_v0 = vmul.f32 %v2421_v6, %v25_v62  ;;  %v254_v47 = vmul.f32 %v2421_v6, %v2202_v39  ;;  %v419_v39 = vld [vmem:[%s3272_s1 + $0xf0] sm:$0xff]  ;;  %v225_v48 = vmul.f32 %v2421_v6, %v31_v24  ;;  %v52_v62 = vld [vmem:[%s3271_s0 + $0x100] sm:$0xff] }
  0xb8   :  { %754 = vmatmul.mubr.f32.gmra.mrb[14].mxu0 %v467_v45  ;;  %1105 = vmatmul.mubr.f32.gmra.mrb[14].mxu1 %v467_v45  ;;  %v311_v28 = vadd.f32 %v2437_v54, %v250_v56  ;;  %v257_v34 = vmul.f32 %v2421_v6, %v2211_v44  ;;  %v2904_v45 = vadd.f32 %v2437_v54, %v222_v25 }
  0xb9   :  { %759 = vmatprep.mubr.f32.mxu0 %v471_v35  ;;  %1109 = vmatprep.mubr.f32.mxu1 %v471_v35  ;;  %v2880_v18 = vadd.f32 %v2437_v54, %v219_v0  ;;  %v46_v35 = vld [vmem:[%s3271_s0 + $0xd0] sm:$0xff]  ;;  %v315_v40 = vadd.f32 %v2437_v54, %v254_v47  ;;  %v476_v57 = vmul.f32 %v419_v39, %v362_v14 }
  0xba   :  { %1761 = vmatpush3.bf16.msra.mxu1 %v1760_v32  ;;  %1689 = vmatpush1.bf16.msra.mxu0 %v1688_v7  ;;  %v228_v32 = vmul.f32 %v2421_v6, %v34_v1  ;;  %v231_v7 = vmul.f32 %v2421_v6, %v37_v3  ;;  %v234_v44 = vmul.f32 %v2421_v6, %v40_v19  ;;  %v65_v1 = vld [vmem:[%s3271_s0 + $0x168] sm:$0xff] }
  0xbb   :  { %v237_v31 = vmul.f32 %v2421_v6, %v43_v5  ;;  %v480_v22 = vmul.f32 %v366_v9, %v2351_v20  ;;  %v479_v4 = vmul.f32 %v422_v50, %v365_v36  ;;  %v240_v26 = vmul.f32 %v2421_v6, %v46_v35 }
  0xbc   :  { %760 = vmatmul.mubr.f32.gmra.mrb[16].mxu0 %v470_v51  ;;  %1110 = vmatmul.mubr.f32.gmra.mrb[16].mxu1 %v470_v51  ;;  %v2911_v51 = vadd.f32 %v2437_v54, %v225_v48  ;;  %v2917_v21 = vadd.f32 %v2437_v54, %v231_v7  ;;  %v368_v20 = vmax.f32 %v311_v28, 0.0  ;;  %v2936_v63 = vadd.f32 %v2437_v54, %v234_v44  ;;  %v70_v48 = vld [vmem:[%s3271_s0 + $0x190] sm:$0xff] }
  0xbd   :  { %765 = vmatprep.mubr.f32.mxu0 %v2800_v42  ;;  %1114 = vmatprep.mubr.f32.mxu1 %v2800_v42  ;;  %v2914_v42 = vadd.f32 %v2437_v54, %v228_v32  ;;  %v2939_v13 = vadd.f32 %v2437_v54, %v237_v31  ;;  %v372_v16 = vmax.f32 %v315_v40, 0.0  ;;  %v314_v17 = vadd.f32 %v2437_v54, %v253_v38  ;;  %v67_v38 = vld [vmem:[%s3271_s0 + $0x178] sm:$0xff] }
  0xbe   :  { %v318_v0 = vadd.f32 %v2437_v54, %v257_v34  ;;  %v2956_v2 = vadd.f32 %v2437_v54, %v240_v26  ;;  %v256_v56 = vmul.f32 %v2421_v6, %v62_v55  ;;  %v260_v24 = vmul.f32 %v2421_v6, %v2227_v52  ;;  %v64_v52 = vld [vmem:[%s3271_s0 + $0x160] sm:$0xff]  ;;  %v428_v31 = vld [vmem:[%s3272_s1 + $0x138] sm:$0xff] }
  0xbf   :  { %v243_v3 = vmul.f32 %v2421_v6, %v49_v58  ;;  %v246_v14 = vmul.f32 %v2421_v6, %v52_v62  ;;  %v249_v9 = vmul.f32 %v2421_v6, %v55_v8  ;;  %v252_v47 = vmul.f32 %v2421_v6, %v58_v29  ;;  %v76_v58 = vld [vmem:[%s3271_s0 + $0x1c0] sm:$0xff] }
  0xc0   :  { %766 = vmatmul.mubr.f32.gmra.mrb[18].mxu0 %v2804_v46  ;;  %1115 = vmatmul.mubr.f32.gmra.mrb[18].mxu1 %v2804_v46  ;;  %v369_v46 = vmax.f32 %v2876_v11, 0.0  ;;  %v255_v11 = vmul.f32 %v2421_v6, %v61_v43  ;;  %v259_v32 = vmul.f32 %v2421_v6, %v65_v1  ;;  %v258_v28 = vmul.f32 %v2421_v6, %v64_v52  ;;  %v434_v1 = vld [vmem:[%s3272_s1 + $0x168] sm:$0xff] }
  0xc1   :  { %771 = vmatprep.mubr.f32.mxu0 %v477_v37  ;;  %1119 = vmatprep.mubr.f32.mxu1 %v477_v37  ;;  %v425_v37 = vld [vmem:[%s3272_s1 + $0x120] sm:$0xff]  ;;  %v2977_v36 = vadd.f32 %v2437_v54, %v243_v3  ;;  %v2984_v7 = vadd.f32 %v2437_v54, %v246_v14  ;;  %v2987_v19 = vadd.f32 %v2437_v54, %v249_v9  ;;  %v371_v35 = vmax.f32 %v314_v17, 0.0 }
  0xc2   :  { %v483_v25 = vmul.f32 %v369_v46, %v2359_v33  ;;  %v482_v39 = vmul.f32 %v425_v37, %v368_v20  ;;  %v2990_v5 = vadd.f32 %v2437_v54, %v252_v47  ;;  %v486_v33 = vmul.f32 %v372_v16, %v2367_v41  ;;  %v73_v41 = vld [vmem:[%s3271_s0 + $0x1a8] sm:$0xff]  ;;  %v431_v37 = vld [vmem:[%s3272_s1 + $0x150] sm:$0xff] }
  0xc3   :  { %v2994_v50 = vadd.f32 %v2437_v54, %v255_v11  ;;  %v261_v34 = vmul.f32 %v2421_v6, %v67_v38  ;;  %v317_v40 = vadd.f32 %v2437_v54, %v256_v56  ;;  %v264_v44 = vmul.f32 %v2421_v6, %v70_v48  ;;  %v437_v11 = vld [vmem:[%s3272_s1 + $0x180] sm:$0xff] }
  0xc4   :  { %772 = vmatmul.mubr.f32.gmra.mrb[20].mxu0 %v476_v57  ;;  %1120 = vmatmul.mubr.f32.gmra.mrb[20].mxu1 %v476_v57  ;;  %v321_v57 = vadd.f32 %v2437_v54, %v260_v24  ;;  %v3010_v55 = vadd.f32 %v2437_v54, %v258_v28  ;;  %v267_v46 = vmul.f32 %v2421_v6, %v73_v41  ;;  %v380_v9 = vmax.f32 %v2820_v12, 0.0  ;;  %v440_v12 = vld [vmem:[%s3272_s1 + $0x198] sm:$0xff] }
  0xc5   :  { %777 = vmatprep.mubr.f32.mxu0 %v480_v22  ;;  %1124 = vmatprep.mubr.f32.mxu1 %v480_v22  ;;  %v375_v22 = vmax.f32 %v318_v0, 0.0  ;;  %v3013_v26 = vadd.f32 %v2437_v54, %v261_v34  ;;  %v3019_v62 = vadd.f32 %v2437_v54, %v264_v44  ;;  %v485_v20 = vmul.f32 %v428_v31, %v371_v35 }
  0xc6   :  { %v374_v8 = vmax.f32 %v317_v40, 0.0  ;;  %v270_v29 = vmul.f32 %v2421_v6, %v76_v58  ;;  %v378_v16 = vmax.f32 %v321_v57, 0.0  ;;  %v3030_v0 = vadd.f32 %v2437_v54, %v267_v46 }
  0xc7   :  { %v489_v43 = vmul.f32 %v375_v22, %v2375_v49  ;;  %v494_v52 = vmul.f32 %v437_v11, %v380_v9  ;;  %v383_v38 = vmax.f32 %v2834_v23, 0.0  ;;  %v443_v23 = vld [vmem:[%s3272_s1 + $0x1b0] sm:$0xff]  ;;  %v1800_v28 = vmov 0.0  }
  0xc8   :  { %778 = vmatmul.mubr.f32.gmra.mrb[22].mxu0 %v479_v4  ;;  %1125 = vmatmul.mubr.f32.gmra.mrb[22].mxu1 %v479_v4  ;;  %v263_v4 = vmul.f32 %v2421_v6, %v2239_v59  ;;  %v320_v59 = vadd.f32 %v2437_v54, %v259_v32  ;;  %v3033_v56 = vadd.f32 %v2437_v54, %v270_v29  ;;  %v340_v35 = vmax.f32 %v2904_v45, 0.0  ;;  %v400_v45 = vld [vmem:[%s3272_s1 + $0x58] sm:$0xff] }
  0xc9   :  { %783 = vmatprep.mubr.f32.mxu0 %v483_v25  ;;  %1129 = vmatprep.mubr.f32.mxu1 %v483_v25  ;;  %v488_v6 = vmul.f32 %v431_v37, %v374_v8  ;;  %v492_v49 = vmul.f32 %v378_v16, %v2383_v60  ;;  %v384_v60 = vmax.f32 %v2831_v53, 0.0  ;;  %v497_v48 = vmul.f32 %v440_v12, %v383_v38 }
  0xca   :  { %v324_v17 = vadd.f32 %v2437_v54, %v263_v4  ;;  %v377_v24 = vmax.f32 %v320_v59, 0.0  ;;  %v3281_v54 = vld [vmem:[#allocation3_spill] sm:$0xff]  ;;  %v386_v53 = vmax.f32 %v2855_v10, 0.0  ;;  %v343_v57 = vmax.f32 %v2911_v51, 0.0  ;;  %v403_v51 = vld [vmem:[%s3272_s1 + $0x70] sm:$0xff] }
  0xcb   :  { %v498_v25 = vmul.f32 %v384_v60, %v2399_v15  ;;  %v346_v41 = vmax.f32 %v2914_v42, 0.0  ;;  %v349_v22 = vmax.f32 %v2917_v21, 0.0  ;;  %v406_v42 = vld [vmem:[%s3272_s1 + $0x88] sm:$0xff]  ;;  %v352_v58 = vmax.f32 %v2936_v63, 0.0  ;;  %v409_v21 = vld [vmem:[%s3272_s1 + $0xa0] sm:$0xff]  ;;  %v412_v63 = vld [vmem:[%s3272_s1 + $0xb8] sm:$0xff] }
  0xcc   :  { %784 = vmatmul.mubr.f32.gmra.mrb[24].mxu0 %v482_v39  ;;  %1130 = vmatmul.mubr.f32.gmra.mrb[24].mxu1 %v482_v39  ;;  %v381_v3 = vmax.f32 %v324_v17, 0.0  ;;  %v491_v14 = vmul.f32 %v434_v1, %v377_v24  ;;  %v387_v39 = vmax.f32 %v2852_v61, 0.0  ;;  %v500_v15 = vmul.f32 %v443_v23, %v386_v53  ;;  %v391_v61 = vld [vmem:[%s3272_s1 + $0x10] sm:$0xff] }
  0xcd   :  { %789 = vmatprep.mubr.f32.mxu0 %v486_v33  ;;  %1134 = vmatprep.mubr.f32.mxu1 %v486_v33  ;;  %v334_v33 = vmax.f32 %v2873_v27, 0.0  ;;  %v394_v27 = vld [vmem:[%s3272_s1 + $0x28] sm:$0xff]  ;;  %v457_v44 = vmul.f32 %v400_v45, %v343_v57  ;;  %v460_v31 = vmul.f32 %v403_v51, %v346_v41  ;;  %v463_v4 = vmul.f32 %v406_v42, %v349_v22 }
  0xce   :  { %v495_v47 = vmul.f32 %v381_v3, %v3281_v54  ;;  %v501_v32 = vmul.f32 %v387_v39, %v2407_v30  ;;  %v337_v30 = vmax.f32 %v2880_v18, 0.0  ;;  %v397_v18 = vld [vmem:[%s3272_s1 + $0x40] sm:$0xff]  ;;  %v466_v46 = vmul.f32 %v409_v21, %v352_v58 }
  0xcf   :  { %v448_v10 = vmul.f32 %v391_v61, %v334_v33  ;;  %v454_v40 = vmul.f32 %v397_v18, %v340_v35  ;;  %v358_v59 = vmax.f32 %v2956_v2, 0.0  ;;  %v418_v2 = vld [vmem:[%s3272_s1 + $0xe8] sm:$0xff]  ;;  %v364_v16 = vmax.f32 %v2984_v7, 0.0  ;;  %v424_v7 = vld [vmem:[%s3272_s1 + $0x118] sm:$0xff] }
  0xd0   :  { %790 = vmatmul.mubr.f32.gmra.mrb[26].mxu0 %v485_v20  ;;  %1135 = vmatmul.mubr.f32.gmra.mrb[26].mxu1 %v485_v20  ;;  %v451_v34 = vmul.f32 %v394_v27, %v337_v30  ;;  %v355_v20 = vmax.f32 %v2939_v13, 0.0  ;;  %v415_v13 = vld [vmem:[%s3272_s1 + $0xd0] sm:$0xff]  ;;  %v373_v3 = vmax.f32 %v2994_v50, 0.0  ;;  %v376_v9 = vmax.f32 %v3010_v55, 0.0  ;;  %v433_v50 = vld [vmem:[%s3272_s1 + $0x160] sm:$0xff]  ;;  %v436_v55 = vld [vmem:[%s3272_s1 + $0x178] sm:$0xff] }
  0xd1   :  { %795 = vmatprep.mubr.f32.mxu0 %v489_v43  ;;  %1139 = vmatprep.mubr.f32.mxu1 %v489_v43  ;;  %v472_v29 = vmul.f32 %v415_v13, %v358_v59  ;;  %v361_v43 = vmax.f32 %v2977_v36, 0.0  ;;  %v421_v36 = vld [vmem:[%s3272_s1 + $0x100] sm:$0xff]  ;;  %v382_v60 = vmax.f32 %v3019_v62, 0.0  ;;  %v385_v38 = vmax.f32 %v3030_v0, 0.0  ;;  %v442_v62 = vld [vmem:[%s3272_s1 + $0x1a8] sm:$0xff] }
  0xd2   :  { %v469_v8 = vmul.f32 %v412_v63, %v355_v20  ;;  %v478_v17 = vmul.f32 %v421_v36, %v364_v16  ;;  %v490_v54 = vmul.f32 %v433_v50, %v376_v9  ;;  %v388_v12 = vmax.f32 %v3033_v56, 0.0  ;;  %v445_v0 = vld [vmem:[%s3272_s1 + $0x1c0] sm:$0xff] }
  0xd3   :  { %v475_v37 = vmul.f32 %v418_v2, %v361_v43 }
  0xd4   :  { %796 = vmatmul.mubr.f32.gmra.mrb[28].mxu0 %v488_v6  ;;  %1140 = vmatmul.mubr.f32.gmra.mrb[28].mxu1 %v488_v6  ;;  %v367_v6 = vmax.f32 %v2987_v19, 0.0  ;;  %v427_v19 = vld [vmem:[%s3272_s1 + $0x130] sm:$0xff]  ;;  %v502_v39 = vmul.f32 %v445_v0, %v388_v12 }
  0xd5   :  { %801 = vmatprep.mubr.f32.mxu0 %v492_v49  ;;  %1144 = vmatprep.mubr.f32.mxu1 %v492_v49  ;;  %v370_v49 = vmax.f32 %v2990_v5, 0.0  ;;  %v430_v5 = vld [vmem:[%s3272_s1 + $0x148] sm:$0xff] }
  0xd6   :  { %v481_v24 = vmul.f32 %v424_v7, %v367_v6 }
  0xd7   :  { %v484_v1 = vmul.f32 %v427_v19, %v370_v49 }
  0xd8   :  { %802 = vmatmul.mubr.f32.gmra.mrb[30].mxu0 %v491_v14  ;;  %1145 = vmatmul.mubr.f32.gmra.mrb[30].mxu1 %v491_v14  ;;  %v487_v14 = vmul.f32 %v430_v5, %v373_v3 }
  0xd9   :  { %807 = vmatprep.mubr.f32.mxu0 %v495_v47  ;;  %1149 = vmatprep.mubr.f32.mxu1 %v495_v47  ;;  %v379_v47 = vmax.f32 %v3013_v26, 0.0  ;;  %v439_v26 = vld [vmem:[%s3272_s1 + $0x190] sm:$0xff] }
  0xdb   :  { %v493_v11 = vmul.f32 %v436_v55, %v379_v47 }
  0xdc   :  { %808 = vmatmul.mubr.f32.gmra.mrb[32].mxu0 %v494_v52  ;;  %1150 = vmatmul.mubr.f32.gmra.mrb[32].mxu1 %v494_v52  ;;  %v496_v52 = vmul.f32 %v439_v26, %v382_v60 }
  0xdd   :  { %813 = vmatprep.mubr.f32.mxu0 %v498_v25  ;;  %1154 = vmatprep.mubr.f32.mxu1 %v498_v25  ;;  %v499_v25 = vmul.f32 %v442_v62, %v385_v38 }
  0xe0   :  { %814 = vmatmul.mubr.f32.gmra.mrb[34].mxu0 %v497_v48  ;;  %1155 = vmatmul.mubr.f32.gmra.mrb[34].mxu1 %v497_v48 }
  0xe1   :  { %819 = vmatprep.mubr.f32.mxu0 %v501_v32  ;;  %1159 = vmatprep.mubr.f32.mxu1 %v501_v32 }
  0xe4   :  { %820 = vmatmul.mubr.f32.gmra.mrb[36].mxu0 %v500_v15  ;;  %1160 = vmatmul.mubr.f32.gmra.mrb[36].mxu1 %v500_v15 }
  0xe5   :  { %890 = vmatprep.mubr.f32.mxu0 %v1800_v28  ;;  %1537 = vmatprep.mubr.msk.f32.mxu1 %vm1801_vm0, %v1800_v28 }
  0xe8   :  { %891 = vmatmul.mubr.f32.vlgmr.msra.gmra.mrb[38].mxu0 %v448_v10  ;;  %1538 = vmatmul.mubr.f32.vlgmr.msra.gmra.mrb[38].mxu1 %v448_v10 }
  0xe9   :  { %896 = vmatprep.mubr.f32.mxu0 %v1800_v28  ;;  %1540 = vmatprep.mubr.msk.f32.mxu1 %vm1801_vm0, %v1800_v28 }
  0xec   :  { %897 = vmatmul.mubr.f32.gmra.mrb[2].mxu0 %v451_v34  ;;  %1541 = vmatmul.mubr.f32.gmra.mrb[40].mxu1 %v451_v34 }
  0xed   :  { %902 = vmatprep.mubr.f32.mxu0 %v1800_v28  ;;  %1543 = vmatprep.mubr.msk.f32.mxu1 %vm1801_vm0, %v1800_v28 }
  0xf0   :  { %903 = vmatmul.mubr.f32.gmra.mrb[4].mxu0 %v454_v40  ;;  %1544 = vmatmul.mubr.f32.gmra.mrb[42].mxu1 %v454_v40 }
  0xf1   :  { %908 = vmatprep.mubr.f32.mxu0 %v1800_v28  ;;  %1546 = vmatprep.mubr.msk.f32.mxu1 %vm1801_vm0, %v1800_v28 }
  0xf4   :  { %909 = vmatmul.mubr.f32.gmra.mrb[6].mxu0 %v457_v44  ;;  %1547 = vmatmul.mubr.f32.gmra.mrb[44].mxu1 %v457_v44 }
  0xf5   :  { %914 = vmatprep.mubr.f32.mxu0 %v1800_v28  ;;  %1549 = vmatprep.mubr.msk.f32.mxu1 %vm1801_vm0, %v1800_v28 }
  0xf8   :  { %915 = vmatmul.mubr.f32.gmra.mrb[8].mxu0 %v460_v31  ;;  %1550 = vmatmul.mubr.f32.gmra.mrb[46].mxu1 %v460_v31 }
  0xf9   :  { %920 = vmatprep.mubr.f32.mxu0 %v1800_v28  ;;  %1552 = vmatprep.mubr.msk.f32.mxu1 %vm1801_vm0, %v1800_v28 }
  0xfc   :  { %921 = vmatmul.mubr.f32.gmra.mrb[10].mxu0 %v463_v4  ;;  %1553 = vmatmul.mubr.f32.gmra.mrb[48].mxu1 %v463_v4 }
  0xfd   :  { %926 = vmatprep.mubr.f32.mxu0 %v1800_v28  ;;  %1555 = vmatprep.mubr.msk.f32.mxu1 %vm1801_vm0, %v1800_v28 }
 0x100   :  { %927 = vmatmul.mubr.f32.gmra.mrb[12].mxu0 %v466_v46  ;;  %1556 = vmatmul.mubr.f32.gmra.mrb[50].mxu1 %v466_v46 }
 0x101   :  { %932 = vmatprep.mubr.f32.mxu0 %v1800_v28  ;;  %1558 = vmatprep.mubr.msk.f32.mxu1 %vm1801_vm0, %v1800_v28 }
 0x104   :  { %933 = vmatmul.mubr.f32.gmra.mrb[14].mxu0 %v469_v8  ;;  %1559 = vmatmul.mubr.f32.gmra.mrb[52].mxu1 %v469_v8 }
 0x105   :  { %938 = vmatprep.mubr.f32.mxu0 %v1800_v28  ;;  %1561 = vmatprep.mubr.msk.f32.mxu1 %vm1801_vm0, %v1800_v28 }
 0x108   :  { %939 = vmatmul.mubr.f32.gmra.mrb[16].mxu0 %v472_v29  ;;  %1562 = vmatmul.mubr.f32.gmra.mrb[54].mxu1 %v472_v29 }
 0x109   :  { %944 = vmatprep.mubr.f32.mxu0 %v1800_v28  ;;  %1564 = vmatprep.mubr.msk.f32.mxu1 %vm1801_vm0, %v1800_v28 }
 0x10c   :  { %945 = vmatmul.mubr.f32.gmra.mrb[18].mxu0 %v475_v37  ;;  %1565 = vmatmul.mubr.f32.gmra.mrb[56].mxu1 %v475_v37 }
 0x10d   :  { %950 = vmatprep.mubr.f32.mxu0 %v1800_v28  ;;  %1567 = vmatprep.mubr.msk.f32.mxu1 %vm1801_vm0, %v1800_v28 }
 0x110   :  { %951 = vmatmul.mubr.f32.gmra.mrb[20].mxu0 %v478_v17  ;;  %1568 = vmatmul.mubr.f32.gmra.mrb[58].mxu1 %v478_v17 }
 0x111   :  { %956 = vmatprep.mubr.f32.mxu0 %v1800_v28  ;;  %1570 = vmatprep.mubr.msk.f32.mxu1 %vm1801_vm0, %v1800_v28 }
 0x114   :  { %957 = vmatmul.mubr.f32.gmra.mrb[22].mxu0 %v481_v24  ;;  %1571 = vmatmul.mubr.f32.gmra.mrb[60].mxu1 %v481_v24 }
 0x115   :  { %962 = vmatprep.mubr.f32.mxu0 %v1800_v28  ;;  %1573 = vmatprep.mubr.msk.f32.mxu1 %vm1801_vm0, %v1800_v28 }
 0x118   :  { %963 = vmatmul.mubr.f32.gmra.mrb[24].mxu0 %v484_v1  ;;  %1574 = vmatmul.mubr.f32.gmra.mrb[62].mxu1 %v484_v1 }
 0x119   :  { %968 = vmatprep.mubr.f32.mxu0 %v1800_v28  ;;  %1576 = vmatprep.mubr.msk.f32.mxu1 %vm1801_vm0, %v1800_v28 }
 0x11c   :  { %969 = vmatmul.mubr.f32.gmra.mrb[26].mxu0 %v487_v14  ;;  %1577 = vmatmul.mubr.f32.gmra.mrb[64].mxu1 %v487_v14 }
 0x11d   :  { %974 = vmatprep.mubr.f32.mxu0 %v1800_v28  ;;  %1579 = vmatprep.mubr.msk.f32.mxu1 %vm1801_vm0, %v1800_v28 }
 0x120   :  { %975 = vmatmul.mubr.f32.gmra.mrb[28].mxu0 %v490_v54  ;;  %1580 = vmatmul.mubr.f32.gmra.mrb[66].mxu1 %v490_v54 }
 0x121   :  { %980 = vmatprep.mubr.f32.mxu0 %v1800_v28  ;;  %1582 = vmatprep.mubr.msk.f32.mxu1 %vm1801_vm0, %v1800_v28 }
 0x124   :  { %981 = vmatmul.mubr.f32.gmra.mrb[30].mxu0 %v493_v11  ;;  %1583 = vmatmul.mubr.f32.gmra.mrb[68].mxu1 %v493_v11 }
 0x125   :  { %986 = vmatprep.mubr.f32.mxu0 %v1800_v28  ;;  %1585 = vmatprep.mubr.msk.f32.mxu1 %vm1801_vm0, %v1800_v28 }
 0x128   :  { %987 = vmatmul.mubr.f32.gmra.mrb[32].mxu0 %v496_v52  ;;  %1586 = vmatmul.mubr.f32.gmra.mrb[70].mxu1 %v496_v52 }
 0x129   :  { %1588 = vmatprep.mubr.msk.f32.mxu1 %vm1801_vm0, %v1800_v28  ;;  %992 = vmatprep.mubr.f32.mxu0 %v1800_v28 }
 0x12c   :  { %1589 = vmatmul.mubr.f32.gmra.mrb[72].mxu1 %v499_v25  ;;  %993 = vmatmul.mubr.f32.gmra.mrb[40].mxu0 %v499_v25 }
 0x12d   :  { %1591 = vmatprep.mubr.msk.f32.mxu1 %vm1801_vm0, %v1800_v28  ;;  %998 = vmatprep.mubr.f32.mxu0 %v1800_v28 }
 0x130   :  { %1592 = vmatmul.mubr.f32.gmra.mrb[74].mxu1 %v502_v39  ;;  %999 = vmatmul.mubr.f32.gmra.mrb[42].mxu0 %v502_v39 }
 0x16f   :  { %v1071_v56 = vpop.f32.mrb[0].mxu1  ;;  %v713_v48 = vpop.f32.mrb[0].mxu0 }
 0x170   :  { %v1073_v53 = vpop.f32.mrb[1].mxu1  ;;  %v715_v32 = vpop.f32.mrb[1].mxu0 }
 0x173   :  { %v1076_v23 = vpop.f32.mrb[2].mxu1 }
 0x174   :  { %v1078_v15 = vpop.f32.mrb[3].mxu1 }
 0x177   :  { %v1081_v33 = vpop.f32.mrb[4].mxu1 }
 0x178   :  { %v1083_v61 = vpop.f32.mrb[5].mxu1 }
 0x17b   :  { %v1086_v10 = vpop.f32.mrb[6].mxu1 }
 0x17c   :  { %v1088_v30 = vpop.f32.mrb[7].mxu1 }
 0x17f   :  { %v1091_v27 = vpop.f32.mrb[8].mxu1 }
 0x180   :  { %v1093_v34 = vpop.f32.mrb[9].mxu1 }
 0x183   :  { %v1096_v35 = vpop.f32.mrb[10].mxu1 }
 0x184   :  { %v1098_v18 = vpop.f32.mrb[11].mxu1 }
 0x187   :  { %v3189_v40 = vpop.f32.mrb[12].mxu1 }
 0x188   :  { %v1103_v57 = vpop.f32.mrb[13].mxu1 }
 0x18b   :  { %v3191_v28 = vpop.f32.mrb[14].mxu1 }
 0x18c   :  { %v1108_v45 = vpop.f32.mrb[15].mxu1 }
 0x18f   :  { %v3193_v44 = vpop.f32.mrb[16].mxu1 }
 0x190   :  { %v1113_v41 = vpop.f32.mrb[17].mxu1 }
 0x193   :  { %v3195_v51 = vpop.f32.mrb[18].mxu1 }
 0x194   :  { %v1118_v31 = vpop.f32.mrb[19].mxu1 }
 0x197   :  { %v3197_v22 = vpop.f32.mrb[20].mxu1 }
 0x198   :  { %v1123_v42 = vpop.f32.mrb[21].mxu1 }
 0x19b   :  { %v3199_v4 = vpop.f32.mrb[22].mxu1 }
 0x19c   :  { %v1128_v58 = vpop.f32.mrb[23].mxu1 }
 0x19f   :  { %v3201_v21 = vpop.f32.mrb[24].mxu1 }
 0x1a0   :  { %v1133_v46 = vpop.f32.mrb[25].mxu1 }
 0x1a3   :  { %v3203_v20 = vpop.f32.mrb[26].mxu1 }
 0x1a4   :  { %v1138_v63 = vpop.f32.mrb[27].mxu1 }
 0x1a7   :  { %v3205_v8 = vpop.f32.mrb[28].mxu1 }
 0x1a8   :  { %v1143_v59 = vpop.f32.mrb[29].mxu1 }
 0x1ab   :  { %v3207_v13 = vpop.f32.mrb[30].mxu1 }
 0x1ac   :  { %v1148_v29 = vpop.f32.mrb[31].mxu1 }
 0x1af   :  { %v3209_v43 = vpop.f32.mrb[32].mxu1 }
 0x1b0   :  { %v1153_v2 = vpop.f32.mrb[33].mxu1 }
 0x1b3   :  { %v3211_v37 = vpop.f32.mrb[34].mxu1  ;;  %v815_v16 = vpop.f32.mrb[34].mxu0 }
 0x1b4   :  { %v1158_v36 = vpop.f32.mrb[35].mxu1  ;;  %v817_v17 = vpop.f32.mrb[35].mxu0 }
 0x1b7   :  { %v3213_v6 = vpop.f32.mrb[36].mxu1  ;;  %v821_v7 = vpop.f32.mrb[36].mxu0 }
 0x1b8   :  { %v1163_v24 = vpop.f32.mrb[37].mxu1  ;;  %v823_v49 = vpop.f32.mrb[37].mxu0 }
 0x1bb   :  { %v1231_v19 = vpop.f32.mrb[38].mxu1  ;;  %v892_v1 = vpop.f32.mrb[38].mxu0 }
 0x1bc   :  { %v1539_v3 = vpop.f32.mrb[39].mxu1  ;;  %v894_v5 = vpop.f32.mrb[39].mxu0 }
 0x1bf   :  { %v898_v14 = vpop.f32.mrb[2].mxu0  ;;  %v1236_v9 = vpop.f32.mrb[40].mxu1 }
 0x1c0   :  { %v900_v50 = vpop.f32.mrb[3].mxu0  ;;  %v1542_v54 = vpop.f32.mrb[41].mxu1 }
 0x1c3   :  { %v904_v47 = vpop.f32.mrb[4].mxu0  ;;  %v1241_v55 = vpop.f32.mrb[42].mxu1 }
 0x1c4   :  { %v906_v11 = vpop.f32.mrb[5].mxu0  ;;  %v1545_v60 = vpop.f32.mrb[43].mxu1 }
 0x1c7   :  { %v910_v26 = vpop.f32.mrb[6].mxu0  ;;  %v1246_v52 = vpop.f32.mrb[44].mxu1 }
 0x1c8   :  { %v912_v38 = vpop.f32.mrb[7].mxu0  ;;  %v1548_v62 = vpop.f32.mrb[45].mxu1 }
 0x1c9   :  { %v1410_v25 = vadd.f32 %v912_v38, %v898_v14 }
 0x1cb   :  { %v916_v12 = vpop.f32.mrb[8].mxu0  ;;  %v1251_v0 = vpop.f32.mrb[46].mxu1 }
 0x1cc   :  { %v918_v39 = vpop.f32.mrb[9].mxu0  ;;  %v1551_v56 = vpop.f32.mrb[47].mxu1 }
 0x1cd   :  { %v1411_v48 = vadd.f32 %v918_v39, %v904_v47 }
 0x1cf   :  { %v922_v53 = vpop.f32.mrb[10].mxu0  ;;  %v1256_v32 = vpop.f32.mrb[48].mxu1 }
 0x1d0   :  { %v1257_v23 = vadd.f32 %v1256_v32, %v1096_v35  ;;  %v924_v15 = vpop.f32.mrb[11].mxu0  ;;  %v1554_v33 = vpop.f32.mrb[49].mxu1 }
 0x1d1   :  { %v1412_v61 = vadd.f32 %v924_v15, %v910_v26 }
 0x1d2   :  { %v1438_v10 = vadd.f32 %v1410_v25, %v1257_v23 }
 0x1d3   :  { %v928_v30 = vpop.f32.mrb[12].mxu0  ;;  %v1261_v27 = vpop.f32.mrb[50].mxu1 }
 0x1d4   :  { %1452 = vst [vmem:[%s3275_s5] sm:$0xff] %v1438_v10  ;;  %v1262_v34 = vadd.f32 %v1261_v27, %v3189_v40  ;;  %v930_v18 = vpop.f32.mrb[13].mxu0  ;;  %v1557_v57 = vpop.f32.mrb[51].mxu1 }
 0x1d5   :  { %v1413_v45 = vadd.f32 %v930_v18, %v916_v12 }
 0x1d6   :  { %v1439_v41 = vadd.f32 %v1411_v48, %v1262_v34 }
 0x1d7   :  { %v934_v31 = vpop.f32.mrb[14].mxu0  ;;  %v1266_v42 = vpop.f32.mrb[52].mxu1 }
 0x1d8   :  { %1453 = vst [vmem:[%s3275_s5 + $0x8] sm:$0xff] %v1439_v41  ;;  %v1267_v35 = vadd.f32 %v1266_v42, %v3191_v28  ;;  %v936_v58 = vpop.f32.mrb[15].mxu0  ;;  %v1560_v46 = vpop.f32.mrb[53].mxu1 }
 0x1d9   :  { %v1414_v63 = vadd.f32 %v936_v58, %v922_v53 }
 0x1da   :  { %v1440_v59 = vadd.f32 %v1412_v61, %v1267_v35 }
 0x1db   :  { %v940_v29 = vpop.f32.mrb[16].mxu0  ;;  %v1271_v2 = vpop.f32.mrb[54].mxu1 }
 0x1dc   :  { %1454 = vst [vmem:[%s3275_s5 + $0x10] sm:$0xff] %v1440_v59  ;;  %v1272_v40 = vadd.f32 %v1271_v2, %v3193_v44  ;;  %v942_v16 = vpop.f32.mrb[17].mxu0  ;;  %v1563_v36 = vpop.f32.mrb[55].mxu1 }
 0x1dd   :  { %v1415_v17 = vadd.f32 %v942_v16, %v928_v30 }
 0x1de   :  { %v1441_v7 = vadd.f32 %v1413_v45, %v1272_v40 }
 0x1df   :  { %v946_v24 = vpop.f32.mrb[18].mxu0  ;;  %v1276_v49 = vpop.f32.mrb[56].mxu1 }
 0x1e0   :  { %1455 = vst [vmem:[%s3275_s5 + $0x18] sm:$0xff] %v1441_v7  ;;  %v1277_v28 = vadd.f32 %v1276_v49, %v3195_v51  ;;  %v948_v19 = vpop.f32.mrb[19].mxu0  ;;  %v1566_v1 = vpop.f32.mrb[57].mxu1 }
 0x1e1   :  { %v1416_v3 = vadd.f32 %v948_v19, %v934_v31 }
 0x1e2   :  { %v1442_v5 = vadd.f32 %v1414_v63, %v1277_v28 }
 0x1e3   :  { %v952_v14 = vpop.f32.mrb[20].mxu0  ;;  %v1281_v9 = vpop.f32.mrb[58].mxu1 }
 0x1e4   :  { %1456 = vst [vmem:[%s3275_s5 + $0x20] sm:$0xff] %v1442_v5  ;;  %v1282_v44 = vadd.f32 %v1281_v9, %v3197_v22  ;;  %v954_v50 = vpop.f32.mrb[21].mxu0  ;;  %v1569_v54 = vpop.f32.mrb[59].mxu1 }
 0x1e5   :  { %v1417_v47 = vadd.f32 %v954_v50, %v940_v29 }
 0x1e6   :  { %v1443_v55 = vadd.f32 %v1415_v17, %v1282_v44 }
 0x1e7   :  { %v958_v11 = vpop.f32.mrb[22].mxu0  ;;  %v1286_v60 = vpop.f32.mrb[60].mxu1 }
 0x1e8   :  { %1457 = vst [vmem:[%s3275_s5 + $0x28] sm:$0xff] %v1443_v55  ;;  %v1287_v51 = vadd.f32 %v1286_v60, %v3199_v4  ;;  %v960_v26 = vpop.f32.mrb[23].mxu0  ;;  %v1572_v52 = vpop.f32.mrb[61].mxu1 }
 0x1e9   :  { %v1418_v38 = vadd.f32 %v960_v26, %v946_v24 }
 0x1ea   :  { %v1444_v62 = vadd.f32 %v1416_v3, %v1287_v51 }
 0x1eb   :  { %v964_v25 = vpop.f32.mrb[24].mxu0  ;;  %v1291_v12 = vpop.f32.mrb[62].mxu1 }
 0x1ec   :  { %1458 = vst [vmem:[%s3275_s5 + $0x30] sm:$0xff] %v1444_v62  ;;  %v1292_v22 = vadd.f32 %v1291_v12, %v3201_v21  ;;  %v966_v0 = vpop.f32.mrb[25].mxu0  ;;  %v1575_v39 = vpop.f32.mrb[63].mxu1 }
 0x1ed   :  { %v1419_v56 = vadd.f32 %v966_v0, %v952_v14 }
 0x1ee   :  { %v1445_v48 = vadd.f32 %v1417_v47, %v1292_v22 }
 0x1ef   :  { %v970_v53 = vpop.f32.mrb[26].mxu0  ;;  %v1296_v32 = vpop.f32.mrb[64].mxu1 }
 0x1f0   :  { %1459 = vst [vmem:[%s3275_s5 + $0x38] sm:$0xff] %v1445_v48  ;;  %v1297_v4 = vadd.f32 %v1296_v32, %v3203_v20  ;;  %v972_v23 = vpop.f32.mrb[27].mxu0  ;;  %v1578_v15 = vpop.f32.mrb[65].mxu1 }
 0x1f1   :  { %v1420_v33 = vadd.f32 %v972_v23, %v958_v11 }
 0x1f2   :  { %v1446_v61 = vadd.f32 %v1418_v38, %v1297_v4 }
 0x1f3   :  { %v976_v10 = vpop.f32.mrb[28].mxu0  ;;  %v1301_v30 = vpop.f32.mrb[66].mxu1 }
 0x1f4   :  { %1460 = vst [vmem:[%s3275_s5 + $0x40] sm:$0xff] %v1446_v61  ;;  %v1302_v21 = vadd.f32 %v1301_v30, %v3205_v8  ;;  %v978_v27 = vpop.f32.mrb[29].mxu0  ;;  %v1581_v34 = vpop.f32.mrb[67].mxu1 }
 0x1f5   :  { %v1421_v18 = vadd.f32 %v978_v27, %v964_v25 }
 0x1f6   :  { %v1447_v57 = vadd.f32 %v1419_v56, %v1302_v21 }
 0x1f7   :  { %v982_v45 = vpop.f32.mrb[30].mxu0  ;;  %v1306_v41 = vpop.f32.mrb[68].mxu1 }
 0x1f8   :  { %1461 = vst [vmem:[%s3275_s5 + $0x48] sm:$0xff] %v1447_v57  ;;  %v1307_v20 = vadd.f32 %v1306_v41, %v3207_v13  ;;  %v984_v31 = vpop.f32.mrb[31].mxu0  ;;  %v1584_v42 = vpop.f32.mrb[69].mxu1 }
 0x1f9   :  { %v1422_v35 = vadd.f32 %v984_v31, %v970_v53 }
 0x1fa   :  { %v1448_v58 = vadd.f32 %v1420_v33, %v1307_v20 }
 0x1fb   :  { %v988_v46 = vpop.f32.mrb[32].mxu0  ;;  %v1311_v63 = vpop.f32.mrb[70].mxu1 }
 0x1fc   :  { %1462 = vst [vmem:[%s3275_s5 + $0x50] sm:$0xff] %v1448_v58  ;;  %v1312_v8 = vadd.f32 %v1311_v63, %v3209_v43  ;;  %v990_v59 = vpop.f32.mrb[33].mxu0  ;;  %v1587_v29 = vpop.f32.mrb[71].mxu1 }
 0x1fd   :  { %v1423_v2 = vadd.f32 %v990_v59, %v976_v10 }
 0x1fe   :  { %v1449_v40 = vadd.f32 %v1421_v18, %v1312_v8 }
 0x1ff   :  { %v1316_v16 = vpop.f32.mrb[72].mxu1  ;;  %v994_v36 = vpop.f32.mrb[40].mxu0 }
 0x200   :  { %1463 = vst [vmem:[%s3275_s5 + $0x58] sm:$0xff] %v1449_v40  ;;  %v1317_v13 = vadd.f32 %v1316_v16, %v3211_v37  ;;  %v1590_v17 = vpop.f32.mrb[73].mxu1  ;;  %v996_v7 = vpop.f32.mrb[41].mxu0 }
 0x202   :  { %v1450_v24 = vadd.f32 %v1422_v35, %v1317_v13 }
 0x203   :  { %v1321_v49 = vpop.f32.mrb[74].mxu1  ;;  %v1000_v28 = vpop.f32.mrb[42].mxu0 }
 0x204   :  { %1464 = vst [vmem:[%s3275_s5 + $0x60] sm:$0xff] %v1450_v24  ;;  %v1322_v43 = vadd.f32 %v1321_v49, %v3213_v6  ;;  %v1593_v19 = vpop.f32.mrb[75].mxu1  ;;  %v1002_v1 = vpop.f32.mrb[43].mxu0 }
 0x206   :  { %v1451_v3 = vadd.f32 %v1423_v2, %v1322_v43 }
 0x208   :  { %1465 = vst [vmem:[%s3275_s5 + $0x68] sm:$0xff] %v1451_v3 }

</bundles_post_ra>
